<compile_context>
chip_gen: v6e
topology: v6e:2x2x1
jax: 0.10.0
libtpu: 0.0.40
codegen_flags: <defaults>
</compile_context>

<pallas_src>
import functools
import math

import jax
import jax.numpy as jnp
from jax import lax
from jax.experimental import pallas as pl
from jax.experimental.pallas import tpu as pltpu


# ----------------------------- kernel ---------------------------------------


def _layer_norm(x, gamma, beta, eps=1e-5):
    mu = jnp.mean(x, axis=-1, keepdims=True)
    var = jnp.mean((x - mu) ** 2, axis=-1, keepdims=True)
    return (x - mu) * lax.rsqrt(var + eps) * gamma + beta


def _encoder_block_kernel(
    v_ref, kq_ref, mask_ref,                  # activations (value, key==query) + mask
    wq_ref, wk_ref, wv_ref,                   # block-diag per-head projections (E, E)
    wo_ref,                                   # output projection, pre-split (heads, d, E)
    vecs_ref,                                 # (6, E): [bo, gamma1, beta1, b2, gamma2, beta2]
    w1_ref, b1_ref, w2_ref,                   # FFN up (E, H), (1, H); FFN down (H, E)
    o_ref,
    *, num_heads, head_dim, seq_len, batch_block, matmul_dtype,
):
    bb, S, d = batch_block, seq_len, head_dim
    rows, E = kq_ref.shape

    def mm(a, b):
        # operands already in matmul_dtype; accumulation always f32.
        return jnp.dot(a, b, preferred_element_type=jnp.float32)

    # Activations arrive as lane-major 2-D slabs (rows = batch_block * S, E).
    kq_raw = kq_ref[...]
    v_raw = v_ref[...]
    kq = kq_raw.astype(jnp.float32)            # residual / LN path stays in f32
    kq_m = kq_raw.astype(matmul_dtype)         # hoisted operand casts (kq used twice)
    v_m = v_raw.astype(matmul_dtype)

    # --- fused per-head Q/K/V projections: one (rows,E)@(E,E) matmul each.
    #     The softmax scale 1/sqrt(E) is already folded into wq.
    q_p = mm(kq_m, wq_ref[...]).reshape(bb, S, E)
    k_p = mm(kq_m, wk_ref[...]).reshape(bb, S, E)
    v_p = mm(v_m, wv_ref[...]).reshape(bb, S, E)

    # Mask predicate hoisted out of the per-head loop: compare + broadcast once.
    is_pad = jnp.broadcast_to(mask_ref[...] == 0.0, (bb, S, S))
    neg_big = jnp.float32(-1e20)

    vecs = vecs_ref[...]                                   # (6, E) f32
    bo, g1, be1, b2, g2, be2 = (vecs[i:i + 1, :] for i in range(6))

    # --- per-head attention with Wo fused into the loop (no lane concat) -----
    attn_out = jnp.broadcast_to(bo, (rows, E))             # accumulator starts at bias
    for h in range(num_heads):
        sl = slice(h * d, (h + 1) * d)
        qh = q_p[:, :, sl].astype(matmul_dtype)            # (bb, S, d)
        kh = k_p[:, :, sl].astype(matmul_dtype)
        vh = v_p[:, :, sl].astype(matmul_dtype)

        # contraction over the last axis of both operands: no explicit K transpose
        energy = jnp.einsum("bqd,bkd->bqk", qh, kh,
                            preferred_element_type=jnp.float32)        # (bb, S, S)
        energy = jnp.where(is_pad, neg_big, energy)

        m = jnp.max(energy, axis=-1, keepdims=True)
        p = jnp.exp(energy - m)
        denom = jnp.sum(p, axis=-1, keepdims=True)
        r = pl.reciprocal(denom, approx=True)              # EUP slot, not a VALU divide
        r = r * (2.0 - denom * r)                          # one Newton step -> ~f32 exact

        # normalize AFTER the PV matmul: multiply on (S, d) instead of (S, S)
        o_h = jnp.einsum("bqk,bkd->bqd", p.astype(matmul_dtype), vh,
                         preferred_element_type=jnp.float32)           # (bb, S, d)
        o_h = (o_h * r).reshape(rows, d)

        # fused output projection: accumulate o_h @ Wo[h]  (== concat(o) @ Wo)
        attn_out = attn_out + mm(o_h.astype(matmul_dtype), wo_ref[h])

    # --- add & norm 1 (residual = query input), FFN, add & norm 2 ------------
    x = _layer_norm(attn_out + kq, g1, be1)
    h1 = jnp.maximum(mm(x.astype(matmul_dtype), w1_ref[...]) + b1_ref[...], 0.0)
    ff = mm(h1.astype(matmul_dtype), w2_ref[...]) + b2
    out = _layer_norm(ff + x, g2, be2)

    o_ref[...] = out.astype(o_ref.dtype)


# ----------------------------- wrapper ---------------------------------------


def _default_batch_block(batch):
    # Keep the grid >= 2 steps so (a) the "parallel" batch axis can shard across
    # v7x's two TensorCores and (b) BlockSpec double-buffering of the activation
    # DMAs actually overlaps with compute (never default to batch_block == B).
    for g in range(2, batch + 1):
        if batch % g == 0:
            return batch // g
    return max(batch, 1)


def _round_up(x, m):
    return -(-x // m) * m


def _vmem_limit_bytes(rows, batch_block, S, E, H, act_bytes, mm_bytes):
    """Scoped-VMEM budget computed from the (padded) block sizes, with headroom."""
    E_p, H_p, S_p = _round_up(E, 128), _round_up(H, 128), _round_up(S, 128)
    rows_p = _round_up(rows, 8)
    # double-buffered activation tiles: value, kq, out (+ mask)
    acts = 2 * (3 * rows_p * E_p * act_bytes + batch_block * 8 * S_p * 4)
    # parameter tiles (budgeted as double-buffered; see Buffered(1) TODO above)
    wts = 2 * ((3 * E_p * E_p + E_p * E_p + 2 * E_p * H_p) * mm_bytes
               + (8 * E_p + 8 * H_p) * 4)
    # f32 in-kernel intermediates: q/k/v_p, attention accumulator, x, ff, h1,
    # one (S,S) energy + exp tile live at a time
    inter = (6 * rows_p * E_p + rows_p * H_p + 2 * rows_p * S_p) * 4
    est = acts + wts + inter
    # 2x headroom, floored at the v5e default scoped limit, capped well below
    # v7x's 64 MiB physical VMEM.
    return int(min(48 * 2 ** 20, max(16 * 2 ** 20, 2 * est)))


def transformer_block(value2d, kq2d, mask, params, *, num_heads, batch, seq_len,
                      batch_block=None):
    """One encoder layer on lane-major 2-D activation slabs.

    value2d / kq2d: (B*S, E) activations (value, key==query); mask: (B, 1, S).
    `params` must come from prepare_encoder_params (block-diag weights, packed
    broadcast vectors, softmax scale folded into Wq, pre-cast matmul operands).
    """
    BS, E = kq2d.shape
    B, S = batch, seq_len
    assert BS == B * S
    head_dim = E // num_heads
    H = params["w1"].shape[1]
    matmul_dtype = jnp.dtype(params["wq"].dtype)
    act_dtype = jnp.dtype(kq2d.dtype)

    if batch_block is None:
        batch_block = _default_batch_block(B)
    assert B % batch_block == 0, "batch must be divisible by batch_block"
    grid = (B // batch_block,)
    rows = batch_block * S

    kernel = functools.partial(
        _encoder_block_kernel,
        num_heads=num_heads, head_dim=head_dim, seq_len=S,
        batch_block=batch_block, matmul_dtype=matmul_dtype)

    tok_spec = pl.BlockSpec((rows, E), lambda b: (b, 0))
    mask_spec = pl.BlockSpec((batch_block, 1, S), lambda b: (b, 0, 0))

    def w_spec(shape):
        # Constant block index across the grid (weights stay resident).
        return pl.BlockSpec(shape, lambda b: (0,) * len(shape))

    in_specs = [
        tok_spec, tok_spec, mask_spec,
        w_spec((E, E)), w_spec((E, E)), w_spec((E, E)),
        w_spec((num_heads, head_dim, E)),
        w_spec((6, E)),
        w_spec((E, H)), w_spec((1, H)), w_spec((H, E)),
    ]

    act_bytes = act_dtype.itemsize
    mm_bytes = matmul_dtype.itemsize
    flops = (2 * B * S * E * E * 4                       # q/k/v/o projections
             + 2 * B * num_heads * S * S * head_dim * 2  # energy + attn@v
             + 2 * B * S * E * H * 2)                    # FFN
    transcendentals = B * num_heads * S * S + 4 * B * S
    bytes_accessed = (act_bytes * 3 * B * S * E + 4 * B * S
                      + mm_bytes * (4 * E * E + 2 * E * H) + 4 * (6 * E + H))

    return pl.pallas_call(
        kernel,
        out_shape=jax.ShapeDtypeStruct((BS, E), act_dtype),
        grid=grid,
        in_specs=in_specs,
        out_specs=pl.BlockSpec((rows, E), lambda b: (b, 0)),
        compiler_params=pltpu.CompilerParams(
            dimension_semantics=("parallel",),           # batch steps are independent
            vmem_limit_bytes=_vmem_limit_bytes(
                rows, batch_block, S, E, H, act_bytes, mm_bytes)),
        cost_estimate=pl.CostEstimate(
            flops=flops, transcendentals=transcendentals,
            bytes_accessed=bytes_accessed),
    )(value2d, kq2d, mask,
      params["wq"], params["wk"], params["wv"], params["wo"],
      params["vecs"], params["w1"], params["b1"], params["w2"])


# ----------------------------- params / encoder glue -------------------------


def init_encoder_params(key, *, vocab_size, embed_size, num_layers, num_heads,
                        forward_expansion, max_length):
    head_dim = embed_size // num_heads
    hidden = forward_expansion * embed_size
    keys = jax.random.split(key, 2 + num_layers)
    params = {
        "word_emb": jax.random.normal(keys[0], (vocab_size, embed_size), jnp.float32),
        "pos_emb": jax.random.normal(keys[1], (max_length, embed_size), jnp.float32),
        "layers": [],
    }
    for i in range(num_layers):
        lk = jax.random.split(keys[2 + i], 6)
        s = 0.05
        layer = {
            # weights stored in math layout (in, out): y = x @ W + b
            "wq": s * jax.random.normal(lk[0], (head_dim, head_dim), jnp.float32),
            "wk": s * jax.random.normal(lk[1], (head_dim, head_dim), jnp.float32),
            "wv": s * jax.random.normal(lk[2], (head_dim, head_dim), jnp.float32),
            "wo": s * jax.random.normal(lk[3], (embed_size, embed_size), jnp.float32),
            "bo": jnp.zeros((1, embed_size), jnp.float32),
            "gamma1": jnp.ones((1, embed_size), jnp.float32),
            "beta1": jnp.zeros((1, embed_size), jnp.float32),
            "w1": s * jax.random.normal(lk[4], (embed_size, hidden), jnp.float32),
            "b1": jnp.zeros((1, hidden), jnp.float32),
            "w2": s * jax.random.normal(lk[5], (hidden, embed_size), jnp.float32),
            "b2": jnp.zeros((1, embed_size), jnp.float32),
            "gamma2": jnp.ones((1, embed_size), jnp.float32),
            "beta2": jnp.zeros((1, embed_size), jnp.float32),
        }
        params["layers"].append(layer)
    return params


def prepare_encoder_params(params, *, num_heads, matmul_dtype=jnp.float32):
    """One-time repack of the PyTorch-style params into kernel layout.

    * per-head (d,d) Q/K/V weights -> block-diagonal (E,E) matrices, so the
      three projections are single MXU matmuls (x @ kron(I_heads, W));
    * softmax scale 1/sqrt(E) folded into Wq;
    * Wo pre-split to (heads, d, E) so it can be fused into the head loop;
    * the six (1,E) broadcast vectors packed into one (6,E) tile;
    * matmul operands pre-cast to `matmul_dtype` (bf16 recommended on all TPU
      generations -- the MXU is natively bf16 even on v5e).
    """
    E = params["word_emb"].shape[1]
    d = E // num_heads
    scale = jnp.float32(1.0 / math.sqrt(E))      # 1/sqrt(embed_size), as in reference
    eye = jnp.eye(num_heads, dtype=jnp.float32)
    layers = []
    for layer in params["layers"]:
        layers.append({
            "wq": (jnp.kron(eye, layer["wq"]) * scale).astype(matmul_dtype),
            "wk": jnp.kron(eye, layer["wk"]).astype(matmul_dtype),
            "wv": jnp.kron(eye, layer["wv"]).astype(matmul_dtype),
            "wo": layer["wo"].reshape(num_heads, d, E).astype(matmul_dtype),
            "w1": layer["w1"].astype(matmul_dtype),
            "w2": layer["w2"].astype(matmul_dtype),
            "b1": layer["b1"],
            "vecs": jnp.concatenate(
                [layer["bo"], layer["gamma1"], layer["beta1"],
                 layer["b2"], layer["gamma2"], layer["beta2"]], axis=0),
        })
    return {"word_emb": params["word_emb"], "pos_emb": params["pos_emb"],
            "layers": layers}


def encoder_forward(params, source_tokens, source_tokens_mask, *, num_heads,
                    act_dtype=jnp.float32):
    """params must come from prepare_encoder_params.
    source_tokens: (B, S) int32; source_tokens_mask: (B, S) {0,1}."""
    B, S = source_tokens.shape
    E = params["word_emb"].shape[1]
    positions = jnp.arange(S, dtype=jnp.int32)
    word = jnp.take(params["word_emb"], source_tokens, axis=0)       # (B, S, E)
    pos = jnp.take(params["pos_emb"], positions, axis=0)[None]       # (1, S, E)
    emb = (word + pos).astype(act_dtype)        # dropout == identity (eval mode)

    mask = source_tokens_mask.astype(jnp.float32)[:, None, :]        # (B, 1, S)

    # Activations travel between layers as lane-major (B*S, E) slabs in
    # act_dtype (bf16 halves activation HBM traffic / VMEM on v6e & v7x).
    emb2d = emb.reshape(B * S, E)
    ctx = emb2d
    for layer in params["layers"]:
        # Reference call: layer(value=ctx, key=emb, query=emb, mask);
        # key == query == emb, so it is DMA'd into the kernel only once.
        ctx = transformer_block(ctx, emb2d, mask, layer,
                                num_heads=num_heads, batch=B, seq_len=S)
    return ctx.reshape(B, S, E).astype(jnp.float32)


# ----------------------------- pure-JAX reference ----------------------------


def _ref_block(value, key, query, mask, p, num_heads):
    B, S, E = query.shape
    d = E // num_heads

    def heads(x, w):
        xh = x.reshape(B, S, num_heads, d)
        return jnp.einsum("bshd,de->bshe", xh, w)

    qh, kh, vh = heads(query, p["wq"]), heads(key, p["wk"]), heads(value, p["wv"])
    energy = jnp.einsum("bqhd,bkhd->bhqk", qh, kh)
    energy = jnp.where(mask[:, None, :, :] == 0, -1e20, energy)
    attn = jax.nn.softmax(energy / jnp.sqrt(jnp.float32(E)), axis=-1)
    out = jnp.einsum("bhqk,bkhd->bqhd", attn, vh).reshape(B, S, E)
    out = out @ p["wo"] + p["bo"]

    def ln(x, g, b):
        mu = x.mean(-1, keepdims=True)
        var = ((x - mu) ** 2).mean(-1, keepdims=True)
        return (x - mu) * lax.rsqrt(var + 1e-5) * g + b

    x = ln(out + query, p["gamma1"], p["beta1"])
    ff = jnp.maximum(x @ p["w1"] + p["b1"], 0.0) @ p["w2"] + p["b2"]
    return ln(ff + x, p["gamma2"], p["beta2"])


def _ref_forward(params, tokens, mask_2d, num_heads):
    B, S = tokens.shape
    pos = jnp.arange(S)[None, :].repeat(B, axis=0)
    emb = params["word_emb"][tokens] + params["pos_emb"][pos]
    mask = mask_2d.astype(jnp.float32)[:, None, :]
    ctx = emb
    for layer in params["layers"]:
        ctx = _ref_block(ctx, emb, emb, mask, layer, num_heads)
    return ctx


# ----------------------------- main ------------------------------------------


if __name__ == "__main__":
    VOCAB = 50
    EMBED = 32
    LAYERS = 2
    HEADS = 4
    FWD_EXP = 4
    MAX_LEN = 16
    B, S = 2, 16

    root = jax.random.PRNGKey(0)
    k_params, k_tokens = jax.random.split(root)

    params = init_encoder_params(
        k_params, vocab_size=VOCAB, embed_size=EMBED, num_layers=LAYERS,
        num_heads=HEADS, forward_expansion=FWD_EXP, max_length=MAX_LEN)

    tokens = jax.random.randint(k_tokens, (B, S), 1, VOCAB, dtype=jnp.int32)
    tokens = tokens.at[0, 12:].set(0).at[1, 9:].set(0)     # introduce padding
    mask = (tokens != 0).astype(jnp.int32)                 # (B, S)

    ref = _ref_forward(params, tokens, mask, HEADS)

    # f32 path (exact semantics of the PyTorch module).
    prepped = prepare_encoder_params(params, num_heads=HEADS,
                                     matmul_dtype=jnp.float32)
    fwd = jax.jit(functools.partial(encoder_forward, num_heads=HEADS,
                                    act_dtype=jnp.float32))
    out = jax.block_until_ready(fwd(prepped, tokens, mask))
    assert out.shape == (B, S, EMBED)
    assert jnp.allclose(out, ref, atol=1e-3, rtol=1e-3), "f32 kernel mismatch vs JAX reference"

    # bf16 fast path: bf16 MXU operands AND bf16 inter-layer activations
    # (recommended on all generations; halves activation DMA bytes on v6e/v7x).
    prepped_bf16 = prepare_encoder_params(params, num_heads=HEADS,
                                          matmul_dtype=jnp.bfloat16)
    fwd_bf16 = jax.jit(functools.partial(encoder_forward, num_heads=HEADS,
                                         act_dtype=jnp.bfloat16))
    out_bf16 = jax.block_until_ready(fwd_bf16(prepped_bf16, tokens, mask))
    assert jnp.allclose(out_bf16, ref, atol=1e-1, rtol=1e-1), "bf16 kernel drifted too far"

    print("KERNEL_OK")
</pallas_src>

<mosaic_0001>
module attributes {stable_mosaic.version = 11 : i64} {
  func.func @_encoder_block_kernel(%arg0: i32, %arg1: memref<16x32xf32, #tpu.memory_space<vmem>>, %arg2: memref<16x32xf32, #tpu.memory_space<vmem>>, %arg3: memref<1x1x16xf32, #tpu.memory_space<vmem>>, %arg4: memref<32x32xf32, #tpu.memory_space<vmem>>, %arg5: memref<32x32xf32, #tpu.memory_space<vmem>>, %arg6: memref<32x32xf32, #tpu.memory_space<vmem>>, %arg7: memref<4x8x32xf32, #tpu.memory_space<vmem>>, %arg8: memref<6x32xf32, #tpu.memory_space<vmem>>, %arg9: memref<32x128xf32, #tpu.memory_space<vmem>>, %arg10: memref<1x128xf32, #tpu.memory_space<vmem>>, %arg11: memref<128x32xf32, #tpu.memory_space<vmem>>, %arg12: memref<16x32xf32, #tpu.memory_space<vmem>>) attributes {dimension_semantics = [#tpu.dimension_semantics<parallel>], iteration_bounds = array<i64: 2>, scalar_prefetch = 0 : i64, scratch_operands = 0 : i64, tpu.core_type = #tpu.core_type<tc>, window_params = [{transform_indices = @transform_0, window_bounds = array<i64: 16, 32>}, {transform_indices = @transform_1, window_bounds = array<i64: 16, 32>}, {transform_indices = @transform_2, window_bounds = array<i64: 1, 1, 16>}, {pipeline_mode = #tpu.pipeline_mode<synchronous>, transform_indices = @transform_3, window_bounds = array<i64: 32, 32>}, {pipeline_mode = #tpu.pipeline_mode<synchronous>, transform_indices = @transform_4, window_bounds = array<i64: 32, 32>}, {pipeline_mode = #tpu.pipeline_mode<synchronous>, transform_indices = @transform_5, window_bounds = array<i64: 32, 32>}, {pipeline_mode = #tpu.pipeline_mode<synchronous>, transform_indices = @transform_6, window_bounds = array<i64: 4, 8, 32>}, {pipeline_mode = #tpu.pipeline_mode<synchronous>, transform_indices = @transform_7, window_bounds = array<i64: 6, 32>}, {pipeline_mode = #tpu.pipeline_mode<synchronous>, transform_indices = @transform_8, window_bounds = array<i64: 32, 128>}, {pipeline_mode = #tpu.pipeline_mode<synchronous>, transform_indices = @transform_9, window_bounds = array<i64: 1, 128>}, {pipeline_mode = #tpu.pipeline_mode<synchronous>, transform_indices = @transform_10, window_bounds = array<i64: 128, 32>}, {transform_indices = @transform_11, window_bounds = array<i64: 16, 32>}]} {
    %c0 = arith.constant 0 : index
    %c0_0 = arith.constant 0 : index
    %0 = vector.load %arg2[%c0, %c0_0] : memref<16x32xf32, #tpu.memory_space<vmem>>, vector<16x32xf32>
    %c0_1 = arith.constant 0 : index
    %c0_2 = arith.constant 0 : index
    %1 = vector.load %arg1[%c0_1, %c0_2] : memref<16x32xf32, #tpu.memory_space<vmem>>, vector<16x32xf32>
    %c0_3 = arith.constant 0 : index
    %c0_4 = arith.constant 0 : index
    %2 = vector.load %arg4[%c0_3, %c0_4] : memref<32x32xf32, #tpu.memory_space<vmem>>, vector<32x32xf32>
    %cst = arith.constant dense<0.000000e+00> : vector<16x32xf32>
    %3 = tpu.matmul %0, %2, %cst {dimension_numbers = #tpu.dot_dimension_numbers<[1], [0], [0], [1], [0, 0, 1, 1], [], []>} : vector<16x32xf32>, vector<32x32xf32>, vector<16x32xf32> -> vector<16x32xf32>
    %4 = vector.shape_cast %3 : vector<16x32xf32> to vector<1x16x32xf32>
    %c0_5 = arith.constant 0 : index
    %c0_6 = arith.constant 0 : index
    %5 = vector.load %arg5[%c0_5, %c0_6] : memref<32x32xf32, #tpu.memory_space<vmem>>, vector<32x32xf32>
    %cst_7 = arith.constant dense<0.000000e+00> : vector<16x32xf32>
    %6 = tpu.matmul %0, %5, %cst_7 {dimension_numbers = #tpu.dot_dimension_numbers<[1], [0], [0], [1], [0, 0, 1, 1], [], []>} : vector<16x32xf32>, vector<32x32xf32>, vector<16x32xf32> -> vector<16x32xf32>
    %7 = vector.shape_cast %6 : vector<16x32xf32> to vector<1x16x32xf32>
    %c0_8 = arith.constant 0 : index
    %c0_9 = arith.constant 0 : index
    %8 = vector.load %arg6[%c0_8, %c0_9] : memref<32x32xf32, #tpu.memory_space<vmem>>, vector<32x32xf32>
    %cst_10 = arith.constant dense<0.000000e+00> : vector<16x32xf32>
    %9 = tpu.matmul %1, %8, %cst_10 {dimension_numbers = #tpu.dot_dimension_numbers<[1], [0], [0], [1], [0, 0, 1, 1], [], []>} : vector<16x32xf32>, vector<32x32xf32>, vector<16x32xf32> -> vector<16x32xf32>
    %10 = vector.shape_cast %9 : vector<16x32xf32> to vector<1x16x32xf32>
    %c0_11 = arith.constant 0 : index
    %c0_12 = arith.constant 0 : index
    %c0_13 = arith.constant 0 : index
    %11 = vector.load %arg3[%c0_11, %c0_12, %c0_13] : memref<1x1x16xf32, #tpu.memory_space<vmem>>, vector<1x1x16xf32>
    %cst_14 = arith.constant 0.000000e+00 : f32
    %12 = vector.broadcast %cst_14 : f32 to vector<1x1x16xf32>
    %13 = arith.cmpf oeq, %11, %12 : vector<1x1x16xf32>
    %14 = vector.shape_cast %13 : vector<1x1x16xi1> to vector<1x1x16xi1>
    %15 = vector.broadcast %14 : vector<1x1x16xi1> to vector<1x16x16xi1>
    %c0_15 = arith.constant 0 : index
    %c0_16 = arith.constant 0 : index
    %16 = vector.load %arg8[%c0_15, %c0_16] : memref<6x32xf32, #tpu.memory_space<vmem>>, vector<6x32xf32>
    %17 = vector.extract_strided_slice %16 {offsets = [0, 0], sizes = [1, 32], strides = [1, 1]} : vector<6x32xf32> to vector<1x32xf32>
    %18 = vector.extract_strided_slice %16 {offsets = [1, 0], sizes = [1, 32], strides = [1, 1]} : vector<6x32xf32> to vector<1x32xf32>
    %19 = vector.extract_strided_slice %16 {offsets = [2, 0], sizes = [1, 32], strides = [1, 1]} : vector<6x32xf32> to vector<1x32xf32>
    %20 = vector.extract_strided_slice %16 {offsets = [3, 0], sizes = [1, 32], strides = [1, 1]} : vector<6x32xf32> to vector<1x32xf32>
    %21 = vector.extract_strided_slice %16 {offsets = [4, 0], sizes = [1, 32], strides = [1, 1]} : vector<6x32xf32> to vector<1x32xf32>
    %22 = vector.extract_strided_slice %16 {offsets = [5, 0], sizes = [1, 32], strides = [1, 1]} : vector<6x32xf32> to vector<1x32xf32>
    %23 = vector.shape_cast %17 : vector<1x32xf32> to vector<1x32xf32>
    %24 = vector.broadcast %23 : vector<1x32xf32> to vector<16x32xf32>
    %25 = vector.extract_strided_slice %4 {offsets = [0, 0, 0], sizes = [1, 16, 8], strides = [1, 1, 1]} : vector<1x16x32xf32> to vector<1x16x8xf32>
    %26 = vector.extract_strided_slice %7 {offsets = [0, 0, 0], sizes = [1, 16, 8], strides = [1, 1, 1]} : vector<1x16x32xf32> to vector<1x16x8xf32>
    %27 = vector.extract_strided_slice %10 {offsets = [0, 0, 0], sizes = [1, 16, 8], strides = [1, 1, 1]} : vector<1x16x32xf32> to vector<1x16x8xf32>
    "tpu.trace_start"() <{level = 10 : i32, message = "bqd,bkd->bqk"}> : () -> ()
    %cst_17 = arith.constant dense<0.000000e+00> : vector<1x16x16xf32>
    %28 = tpu.matmul %25, %26, %cst_17 {dimension_numbers = #tpu.dot_dimension_numbers<[2], [2], [1], [1], [0, 0, 0, 1, 1, 1], [0], [0]>} : vector<1x16x8xf32>, vector<1x16x8xf32>, vector<1x16x16xf32> -> vector<1x16x16xf32>
    %cst_18 = arith.constant -1.000000e+20 : f32
    "tpu.trace_stop"() : () -> ()
    %29 = vector.broadcast %cst_18 : f32 to vector<1x16x16xf32>
    %30 = arith.select %15, %29, %28 : vector<1x16x16xi1>, vector<1x16x16xf32>
    %cst_19 = arith.constant dense<0xFF800000> : vector<1x16xf32>
    %31 = vector.multi_reduction <maximumf>, %30, %cst_19 [2] : vector<1x16x16xf32> to vector<1x16xf32>
    %32 = vector.shape_cast %31 : vector<1x16xf32> to vector<1x16x1xf32>
    %33 = vector.broadcast %32 : vector<1x16x1xf32> to vector<1x16x16xf32>
    %34 = arith.subf %30, %33 : vector<1x16x16xf32>
    %35 = math.exp %34 : vector<1x16x16xf32>
    %cst_20 = arith.constant dense<0.000000e+00> : vector<1x16xf32>
    %36 = vector.multi_reduction <add>, %35, %cst_20 [2] : vector<1x16x16xf32> to vector<1x16xf32>
    %37 = vector.shape_cast %36 : vector<1x16xf32> to vector<1x16x1xf32>
    %38 = tpu.reciprocal %37 {approx = true} : vector<1x16x1xf32> -> vector<1x16x1xf32>
    %39 = arith.mulf %37, %38 : vector<1x16x1xf32>
    %cst_21 = arith.constant 2.000000e+00 : f32
    %40 = vector.broadcast %cst_21 : f32 to vector<1x16x1xf32>
    %41 = arith.subf %40, %39 : vector<1x16x1xf32>
    %42 = arith.mulf %38, %41 : vector<1x16x1xf32>
    "tpu.trace_start"() <{level = 10 : i32, message = "bqk,bkd->bqd"}> : () -> ()
    %cst_22 = arith.constant dense<0.000000e+00> : vector<1x16x8xf32>
    %43 = tpu.matmul %35, %27, %cst_22 {dimension_numbers = #tpu.dot_dimension_numbers<[2], [1], [1], [2], [0, 0, 0, 1, 1, 2], [0], [0]>} : vector<1x16x16xf32>, vector<1x16x8xf32>, vector<1x16x8xf32> -> vector<1x16x8xf32>
    "tpu.trace_stop"() : () -> ()
    %44 = vector.broadcast %42 : vector<1x16x1xf32> to vector<1x16x8xf32>
    %45 = arith.mulf %43, %44 : vector<1x16x8xf32>
    %46 = vector.shape_cast %45 : vector<1x16x8xf32> to vector<16x8xf32>
    %c0_23 = arith.constant 0 : index
    %c0_24 = arith.constant 0 : index
    %c0_25 = arith.constant 0 : index
    %47 = vector.load %arg7[%c0_23, %c0_24, %c0_25] : memref<4x8x32xf32, #tpu.memory_space<vmem>>, vector<1x8x32xf32>
    %48 = vector.shape_cast %47 : vector<1x8x32xf32> to vector<8x32xf32>
    %cst_26 = arith.constant dense<0.000000e+00> : vector<16x32xf32>
    %49 = tpu.matmul %46, %48, %cst_26 {dimension_numbers = #tpu.dot_dimension_numbers<[1], [0], [0], [1], [0, 0, 1, 1], [], []>} : vector<16x8xf32>, vector<8x32xf32>, vector<16x32xf32> -> vector<16x32xf32>
    %50 = arith.addf %24, %49 : vector<16x32xf32>
    %51 = vector.extract_strided_slice %4 {offsets = [0, 0, 8], sizes = [1, 16, 8], strides = [1, 1, 1]} : vector<1x16x32xf32> to vector<1x16x8xf32>
    %52 = vector.extract_strided_slice %7 {offsets = [0, 0, 8], sizes = [1, 16, 8], strides = [1, 1, 1]} : vector<1x16x32xf32> to vector<1x16x8xf32>
    %53 = vector.extract_strided_slice %10 {offsets = [0, 0, 8], sizes = [1, 16, 8], strides = [1, 1, 1]} : vector<1x16x32xf32> to vector<1x16x8xf32>
    "tpu.trace_start"() <{level = 10 : i32, message = "bqd,bkd->bqk"}> : () -> ()
    %cst_27 = arith.constant dense<0.000000e+00> : vector<1x16x16xf32>
    %54 = tpu.matmul %51, %52, %cst_27 {dimension_numbers = #tpu.dot_dimension_numbers<[2], [2], [1], [1], [0, 0, 0, 1, 1, 1], [0], [0]>} : vector<1x16x8xf32>, vector<1x16x8xf32>, vector<1x16x16xf32> -> vector<1x16x16xf32>
    %cst_28 = arith.constant -1.000000e+20 : f32
    "tpu.trace_stop"() : () -> ()
    %55 = vector.broadcast %cst_28 : f32 to vector<1x16x16xf32>
    %56 = arith.select %15, %55, %54 : vector<1x16x16xi1>, vector<1x16x16xf32>
    %cst_29 = arith.constant dense<0xFF800000> : vector<1x16xf32>
    %57 = vector.multi_reduction <maximumf>, %56, %cst_29 [2] : vector<1x16x16xf32> to vector<1x16xf32>
    %58 = vector.shape_cast %57 : vector<1x16xf32> to vector<1x16x1xf32>
    %59 = vector.broadcast %58 : vector<1x16x1xf32> to vector<1x16x16xf32>
    %60 = arith.subf %56, %59 : vector<1x16x16xf32>
    %61 = math.exp %60 : vector<1x16x16xf32>
    %cst_30 = arith.constant dense<0.000000e+00> : vector<1x16xf32>
    %62 = vector.multi_reduction <add>, %61, %cst_30 [2] : vector<1x16x16xf32> to vector<1x16xf32>
    %63 = vector.shape_cast %62 : vector<1x16xf32> to vector<1x16x1xf32>
    %64 = tpu.reciprocal %63 {approx = true} : vector<1x16x1xf32> -> vector<1x16x1xf32>
    %65 = arith.mulf %63, %64 : vector<1x16x1xf32>
    %cst_31 = arith.constant 2.000000e+00 : f32
    %66 = vector.broadcast %cst_31 : f32 to vector<1x16x1xf32>
    %67 = arith.subf %66, %65 : vector<1x16x1xf32>
    %68 = arith.mulf %64, %67 : vector<1x16x1xf32>
    "tpu.trace_start"() <{level = 10 : i32, message = "bqk,bkd->bqd"}> : () -> ()
    %cst_32 = arith.constant dense<0.000000e+00> : vector<1x16x8xf32>
    %69 = tpu.matmul %61, %53, %cst_32 {dimension_numbers = #tpu.dot_dimension_numbers<[2], [1], [1], [2], [0, 0, 0, 1, 1, 2], [0], [0]>} : vector<1x16x16xf32>, vector<1x16x8xf32>, vector<1x16x8xf32> -> vector<1x16x8xf32>
    "tpu.trace_stop"() : () -> ()
    %70 = vector.broadcast %68 : vector<1x16x1xf32> to vector<1x16x8xf32>
    %71 = arith.mulf %69, %70 : vector<1x16x8xf32>
    %72 = vector.shape_cast %71 : vector<1x16x8xf32> to vector<16x8xf32>
    %c1 = arith.constant 1 : index
    %c0_33 = arith.constant 0 : index
    %c0_34 = arith.constant 0 : index
    %73 = vector.load %arg7[%c1, %c0_33, %c0_34] : memref<4x8x32xf32, #tpu.memory_space<vmem>>, vector<1x8x32xf32>
    %74 = vector.shape_cast %73 : vector<1x8x32xf32> to vector<8x32xf32>
    %cst_35 = arith.constant dense<0.000000e+00> : vector<16x32xf32>
    %75 = tpu.matmul %72, %74, %cst_35 {dimension_numbers = #tpu.dot_dimension_numbers<[1], [0], [0], [1], [0, 0, 1, 1], [], []>} : vector<16x8xf32>, vector<8x32xf32>, vector<16x32xf32> -> vector<16x32xf32>
    %76 = arith.addf %50, %75 : vector<16x32xf32>
    %77 = vector.extract_strided_slice %4 {offsets = [0, 0, 16], sizes = [1, 16, 8], strides = [1, 1, 1]} : vector<1x16x32xf32> to vector<1x16x8xf32>
    %78 = vector.extract_strided_slice %7 {offsets = [0, 0, 16], sizes = [1, 16, 8], strides = [1, 1, 1]} : vector<1x16x32xf32> to vector<1x16x8xf32>
    %79 = vector.extract_strided_slice %10 {offsets = [0, 0, 16], sizes = [1, 16, 8], strides = [1, 1, 1]} : vector<1x16x32xf32> to vector<1x16x8xf32>
    "tpu.trace_start"() <{level = 10 : i32, message = "bqd,bkd->bqk"}> : () -> ()
    %cst_36 = arith.constant dense<0.000000e+00> : vector<1x16x16xf32>
    %80 = tpu.matmul %77, %78, %cst_36 {dimension_numbers = #tpu.dot_dimension_numbers<[2], [2], [1], [1], [0, 0, 0, 1, 1, 1], [0], [0]>} : vector<1x16x8xf32>, vector<1x16x8xf32>, vector<1x16x16xf32> -> vector<1x16x16xf32>
    %cst_37 = arith.constant -1.000000e+20 : f32
    "tpu.trace_stop"() : () -> ()
    %81 = vector.broadcast %cst_37 : f32 to vector<1x16x16xf32>
    %82 = arith.select %15, %81, %80 : vector<1x16x16xi1>, vector<1x16x16xf32>
    %cst_38 = arith.constant dense<0xFF800000> : vector<1x16xf32>
    %83 = vector.multi_reduction <maximumf>, %82, %cst_38 [2] : vector<1x16x16xf32> to vector<1x16xf32>
    %84 = vector.shape_cast %83 : vector<1x16xf32> to vector<1x16x1xf32>
    %85 = vector.broadcast %84 : vector<1x16x1xf32> to vector<1x16x16xf32>
    %86 = arith.subf %82, %85 : vector<1x16x16xf32>
    %87 = math.exp %86 : vector<1x16x16xf32>
    %cst_39 = arith.constant dense<0.000000e+00> : vector<1x16xf32>
    %88 = vector.multi_reduction <add>, %87, %cst_39 [2] : vector<1x16x16xf32> to vector<1x16xf32>
    %89 = vector.shape_cast %88 : vector<1x16xf32> to vector<1x16x1xf32>
    %90 = tpu.reciprocal %89 {approx = true} : vector<1x16x1xf32> -> vector<1x16x1xf32>
    %91 = arith.mulf %89, %90 : vector<1x16x1xf32>
    %cst_40 = arith.constant 2.000000e+00 : f32
    %92 = vector.broadcast %cst_40 : f32 to vector<1x16x1xf32>
    %93 = arith.subf %92, %91 : vector<1x16x1xf32>
    %94 = arith.mulf %90, %93 : vector<1x16x1xf32>
    "tpu.trace_start"() <{level = 10 : i32, message = "bqk,bkd->bqd"}> : () -> ()
    %cst_41 = arith.constant dense<0.000000e+00> : vector<1x16x8xf32>
    %95 = tpu.matmul %87, %79, %cst_41 {dimension_numbers = #tpu.dot_dimension_numbers<[2], [1], [1], [2], [0, 0, 0, 1, 1, 2], [0], [0]>} : vector<1x16x16xf32>, vector<1x16x8xf32>, vector<1x16x8xf32> -> vector<1x16x8xf32>
    "tpu.trace_stop"() : () -> ()
    %96 = vector.broadcast %94 : vector<1x16x1xf32> to vector<1x16x8xf32>
    %97 = arith.mulf %95, %96 : vector<1x16x8xf32>
    %98 = vector.shape_cast %97 : vector<1x16x8xf32> to vector<16x8xf32>
    %c2 = arith.constant 2 : index
    %c0_42 = arith.constant 0 : index
    %c0_43 = arith.constant 0 : index
    %99 = vector.load %arg7[%c2, %c0_42, %c0_43] : memref<4x8x32xf32, #tpu.memory_space<vmem>>, vector<1x8x32xf32>
    %100 = vector.shape_cast %99 : vector<1x8x32xf32> to vector<8x32xf32>
    %cst_44 = arith.constant dense<0.000000e+00> : vector<16x32xf32>
    %101 = tpu.matmul %98, %100, %cst_44 {dimension_numbers = #tpu.dot_dimension_numbers<[1], [0], [0], [1], [0, 0, 1, 1], [], []>} : vector<16x8xf32>, vector<8x32xf32>, vector<16x32xf32> -> vector<16x32xf32>
    %102 = arith.addf %76, %101 : vector<16x32xf32>
    %103 = vector.extract_strided_slice %4 {offsets = [0, 0, 24], sizes = [1, 16, 8], strides = [1, 1, 1]} : vector<1x16x32xf32> to vector<1x16x8xf32>
    %104 = vector.extract_strided_slice %7 {offsets = [0, 0, 24], sizes = [1, 16, 8], strides = [1, 1, 1]} : vector<1x16x32xf32> to vector<1x16x8xf32>
    %105 = vector.extract_strided_slice %10 {offsets = [0, 0, 24], sizes = [1, 16, 8], strides = [1, 1, 1]} : vector<1x16x32xf32> to vector<1x16x8xf32>
    "tpu.trace_start"() <{level = 10 : i32, message = "bqd,bkd->bqk"}> : () -> ()
    %cst_45 = arith.constant dense<0.000000e+00> : vector<1x16x16xf32>
    %106 = tpu.matmul %103, %104, %cst_45 {dimension_numbers = #tpu.dot_dimension_numbers<[2], [2], [1], [1], [0, 0, 0, 1, 1, 1], [0], [0]>} : vector<1x16x8xf32>, vector<1x16x8xf32>, vector<1x16x16xf32> -> vector<1x16x16xf32>
    %cst_46 = arith.constant -1.000000e+20 : f32
    "tpu.trace_stop"() : () -> ()
    %107 = vector.broadcast %cst_46 : f32 to vector<1x16x16xf32>
    %108 = arith.select %15, %107, %106 : vector<1x16x16xi1>, vector<1x16x16xf32>
    %cst_47 = arith.constant dense<0xFF800000> : vector<1x16xf32>
    %109 = vector.multi_reduction <maximumf>, %108, %cst_47 [2] : vector<1x16x16xf32> to vector<1x16xf32>
    %110 = vector.shape_cast %109 : vector<1x16xf32> to vector<1x16x1xf32>
    %111 = vector.broadcast %110 : vector<1x16x1xf32> to vector<1x16x16xf32>
    %112 = arith.subf %108, %111 : vector<1x16x16xf32>
    %113 = math.exp %112 : vector<1x16x16xf32>
    %cst_48 = arith.constant dense<0.000000e+00> : vector<1x16xf32>
    %114 = vector.multi_reduction <add>, %113, %cst_48 [2] : vector<1x16x16xf32> to vector<1x16xf32>
    %115 = vector.shape_cast %114 : vector<1x16xf32> to vector<1x16x1xf32>
    %116 = tpu.reciprocal %115 {approx = true} : vector<1x16x1xf32> -> vector<1x16x1xf32>
    %117 = arith.mulf %115, %116 : vector<1x16x1xf32>
    %cst_49 = arith.constant 2.000000e+00 : f32
    %118 = vector.broadcast %cst_49 : f32 to vector<1x16x1xf32>
    %119 = arith.subf %118, %117 : vector<1x16x1xf32>
    %120 = arith.mulf %116, %119 : vector<1x16x1xf32>
    "tpu.trace_start"() <{level = 10 : i32, message = "bqk,bkd->bqd"}> : () -> ()
    %cst_50 = arith.constant dense<0.000000e+00> : vector<1x16x8xf32>
    %121 = tpu.matmul %113, %105, %cst_50 {dimension_numbers = #tpu.dot_dimension_numbers<[2], [1], [1], [2], [0, 0, 0, 1, 1, 2], [0], [0]>} : vector<1x16x16xf32>, vector<1x16x8xf32>, vector<1x16x8xf32> -> vector<1x16x8xf32>
    "tpu.trace_stop"() : () -> ()
    %122 = vector.broadcast %120 : vector<1x16x1xf32> to vector<1x16x8xf32>
    %123 = arith.mulf %121, %122 : vector<1x16x8xf32>
    %124 = vector.shape_cast %123 : vector<1x16x8xf32> to vector<16x8xf32>
    %c3 = arith.constant 3 : index
    %c0_51 = arith.constant 0 : index
    %c0_52 = arith.constant 0 : index
    %125 = vector.load %arg7[%c3, %c0_51, %c0_52] : memref<4x8x32xf32, #tpu.memory_space<vmem>>, vector<1x8x32xf32>
    %126 = vector.shape_cast %125 : vector<1x8x32xf32> to vector<8x32xf32>
    %cst_53 = arith.constant dense<0.000000e+00> : vector<16x32xf32>
    %127 = tpu.matmul %124, %126, %cst_53 {dimension_numbers = #tpu.dot_dimension_numbers<[1], [0], [0], [1], [0, 0, 1, 1], [], []>} : vector<16x8xf32>, vector<8x32xf32>, vector<16x32xf32> -> vector<16x32xf32>
    %128 = arith.addf %102, %127 : vector<16x32xf32>
    %129 = arith.addf %128, %0 : vector<16x32xf32>
    %cst_54 = arith.constant dense<0.000000e+00> : vector<16xf32>
    %130 = vector.multi_reduction <add>, %129, %cst_54 [1] : vector<16x32xf32> to vector<16xf32>
    %131 = vector.shape_cast %130 : vector<16xf32> to vector<16x1xf32>
    %cst_55 = arith.constant 3.200000e+01 : f32
    %132 = vector.broadcast %cst_55 : f32 to vector<16x1xf32>
    %133 = arith.divf %131, %132 : vector<16x1xf32>
    %134 = vector.broadcast %133 : vector<16x1xf32> to vector<16x32xf32>
    %135 = arith.subf %129, %134 : vector<16x32xf32>
    %136 = arith.mulf %135, %135 : vector<16x32xf32>
    %cst_56 = arith.constant dense<0.000000e+00> : vector<16xf32>
    %137 = vector.multi_reduction <add>, %136, %cst_56 [1] : vector<16x32xf32> to vector<16xf32>
    %138 = vector.shape_cast %137 : vector<16xf32> to vector<16x1xf32>
    %cst_57 = arith.constant 3.200000e+01 : f32
    %139 = vector.broadcast %cst_57 : f32 to vector<16x1xf32>
    %140 = arith.divf %138, %139 : vector<16x1xf32>
    %141 = vector.broadcast %133 : vector<16x1xf32> to vector<16x32xf32>
    %142 = arith.subf %129, %141 : vector<16x32xf32>
    %cst_58 = arith.constant 9.99999974E-6 : f32
    %143 = vector.broadcast %cst_58 : f32 to vector<16x1xf32>
    %144 = arith.addf %140, %143 : vector<16x1xf32>
    %145 = math.rsqrt %144 : vector<16x1xf32>
    %146 = vector.broadcast %145 : vector<16x1xf32> to vector<16x32xf32>
    %147 = arith.mulf %142, %146 : vector<16x32xf32>
    %148 = vector.broadcast %18 : vector<1x32xf32> to vector<16x32xf32>
    %149 = arith.mulf %147, %148 : vector<16x32xf32>
    %150 = vector.broadcast %19 : vector<1x32xf32> to vector<16x32xf32>
    %151 = arith.addf %149, %150 : vector<16x32xf32>
    %c0_59 = arith.constant 0 : index
    %c0_60 = arith.constant 0 : index
    %152 = vector.load %arg9[%c0_59, %c0_60] : memref<32x128xf32, #tpu.memory_space<vmem>>, vector<32x128xf32>
    %cst_61 = arith.constant dense<0.000000e+00> : vector<16x128xf32>
    %153 = tpu.matmul %151, %152, %cst_61 {dimension_numbers = #tpu.dot_dimension_numbers<[1], [0], [0], [1], [0, 0, 1, 1], [], []>} : vector<16x32xf32>, vector<32x128xf32>, vector<16x128xf32> -> vector<16x128xf32>
    %c0_62 = arith.constant 0 : index
    %c0_63 = arith.constant 0 : index
    %154 = vector.load %arg10[%c0_62, %c0_63] : memref<1x128xf32, #tpu.memory_space<vmem>>, vector<1x128xf32>
    %155 = vector.broadcast %154 : vector<1x128xf32> to vector<16x128xf32>
    %156 = arith.addf %153, %155 : vector<16x128xf32>
    %cst_64 = arith.constant 0.000000e+00 : f32
    %157 = vector.broadcast %cst_64 : f32 to vector<16x128xf32>
    %158 = arith.maximumf %156, %157 : vector<16x128xf32>
    %c0_65 = arith.constant 0 : index
    %c0_66 = arith.constant 0 : index
    %159 = vector.load %arg11[%c0_65, %c0_66] : memref<128x32xf32, #tpu.memory_space<vmem>>, vector<128x32xf32>
    %cst_67 = arith.constant dense<0.000000e+00> : vector<16x32xf32>
    %160 = tpu.matmul %158, %159, %cst_67 {dimension_numbers = #tpu.dot_dimension_numbers<[1], [0], [0], [1], [0, 0, 1, 1], [], []>} : vector<16x128xf32>, vector<128x32xf32>, vector<16x32xf32> -> vector<16x32xf32>
    %161 = vector.broadcast %20 : vector<1x32xf32> to vector<16x32xf32>
    %162 = arith.addf %160, %161 : vector<16x32xf32>
    %163 = arith.addf %162, %151 : vector<16x32xf32>
    %cst_68 = arith.constant dense<0.000000e+00> : vector<16xf32>
    %164 = vector.multi_reduction <add>, %163, %cst_68 [1] : vector<16x32xf32> to vector<16xf32>
    %165 = vector.shape_cast %164 : vector<16xf32> to vector<16x1xf32>
    %cst_69 = arith.constant 3.200000e+01 : f32
    %166 = vector.broadcast %cst_69 : f32 to vector<16x1xf32>
    %167 = arith.divf %165, %166 : vector<16x1xf32>
    %168 = vector.broadcast %167 : vector<16x1xf32> to vector<16x32xf32>
    %169 = arith.subf %163, %168 : vector<16x32xf32>
    %170 = arith.mulf %169, %169 : vector<16x32xf32>
    %cst_70 = arith.constant dense<0.000000e+00> : vector<16xf32>
    %171 = vector.multi_reduction <add>, %170, %cst_70 [1] : vector<16x32xf32> to vector<16xf32>
    %172 = vector.shape_cast %171 : vector<16xf32> to vector<16x1xf32>
    %cst_71 = arith.constant 3.200000e+01 : f32
    %173 = vector.broadcast %cst_71 : f32 to vector<16x1xf32>
    %174 = arith.divf %172, %173 : vector<16x1xf32>
    %175 = vector.broadcast %167 : vector<16x1xf32> to vector<16x32xf32>
    %176 = arith.subf %163, %175 : vector<16x32xf32>
    %cst_72 = arith.constant 9.99999974E-6 : f32
    %177 = vector.broadcast %cst_72 : f32 to vector<16x1xf32>
    %178 = arith.addf %174, %177 : vector<16x1xf32>
    %179 = math.rsqrt %178 : vector<16x1xf32>
    %180 = vector.broadcast %179 : vector<16x1xf32> to vector<16x32xf32>
    %181 = arith.mulf %176, %180 : vector<16x32xf32>
    %182 = vector.broadcast %21 : vector<1x32xf32> to vector<16x32xf32>
    %183 = arith.mulf %181, %182 : vector<16x32xf32>
    %184 = vector.broadcast %22 : vector<1x32xf32> to vector<16x32xf32>
    %185 = arith.addf %183, %184 : vector<16x32xf32>
    %c0_73 = arith.constant 0 : index
    %c0_74 = arith.constant 0 : index
    %186 = vector.load %arg12[%c0_73, %c0_74] : memref<16x32xf32, #tpu.memory_space<vmem>>, vector<16x32xf32>
    tpu.vector_store %arg12[%c0_73, %c0_74], %185 {strides = array<i32>} : memref<16x32xf32, #tpu.memory_space<vmem>>, vector<16x32xf32>,
    return
  }
  func.func @transform_0(%arg0: i32) -> (i32, i32) {
    %c0_i32 = arith.constant 0 : i32
    %c0_i32_0 = arith.constant 0 : i32
    return %arg0, %c0_i32 : i32, i32
  }
  func.func @transform_1(%arg0: i32) -> (i32, i32) {
    %c0_i32 = arith.constant 0 : i32
    %c0_i32_0 = arith.constant 0 : i32
    return %arg0, %c0_i32 : i32, i32
  }
  func.func @transform_2(%arg0: i32) -> (i32, i32, i32) {
    %c0_i32 = arith.constant 0 : i32
    %c0_i32_0 = arith.constant 0 : i32
    %c0_i32_1 = arith.constant 0 : i32
    return %arg0, %c0_i32, %c0_i32_0 : i32, i32, i32
  }
  func.func @transform_3(%arg0: i32) -> (i32, i32) {
    %c0_i32 = arith.constant 0 : i32
    %c0_i32_0 = arith.constant 0 : i32
    %c0_i32_1 = arith.constant 0 : i32
    return %c0_i32, %c0_i32_0 : i32, i32
  }
  func.func @transform_4(%arg0: i32) -> (i32, i32) {
    %c0_i32 = arith.constant 0 : i32
    %c0_i32_0 = arith.constant 0 : i32
    %c0_i32_1 = arith.constant 0 : i32
    return %c0_i32, %c0_i32_0 : i32, i32
  }
  func.func @transform_5(%arg0: i32) -> (i32, i32) {
    %c0_i32 = arith.constant 0 : i32
    %c0_i32_0 = arith.constant 0 : i32
    %c0_i32_1 = arith.constant 0 : i32
    return %c0_i32, %c0_i32_0 : i32, i32
  }
  func.func @transform_6(%arg0: i32) -> (i32, i32, i32) {
    %c0_i32 = arith.constant 0 : i32
    %c0_i32_0 = arith.constant 0 : i32
    %c0_i32_1 = arith.constant 0 : i32
    %c0_i32_2 = arith.constant 0 : i32
    return %c0_i32, %c0_i32_0, %c0_i32_1 : i32, i32, i32
  }
  func.func @transform_7(%arg0: i32) -> (i32, i32) {
    %c0_i32 = arith.constant 0 : i32
    %c0_i32_0 = arith.constant 0 : i32
    %c0_i32_1 = arith.constant 0 : i32
    return %c0_i32, %c0_i32_0 : i32, i32
  }
  func.func @transform_8(%arg0: i32) -> (i32, i32) {
    %c0_i32 = arith.constant 0 : i32
    %c0_i32_0 = arith.constant 0 : i32
    %c0_i32_1 = arith.constant 0 : i32
    return %c0_i32, %c0_i32_0 : i32, i32
  }
  func.func @transform_9(%arg0: i32) -> (i32, i32) {
    %c0_i32 = arith.constant 0 : i32
    %c0_i32_0 = arith.constant 0 : i32
    %c0_i32_1 = arith.constant 0 : i32
    return %c0_i32, %c0_i32_0 : i32, i32
  }
  func.func @transform_10(%arg0: i32) -> (i32, i32) {
    %c0_i32 = arith.constant 0 : i32
    %c0_i32_0 = arith.constant 0 : i32
    %c0_i32_1 = arith.constant 0 : i32
    return %c0_i32, %c0_i32_0 : i32, i32
  }
  func.func @transform_11(%arg0: i32) -> (i32, i32) {
    %c0_i32 = arith.constant 0 : i32
    %c0_i32_0 = arith.constant 0 : i32
    return %arg0, %c0_i32 : i32, i32
  }
}

module attributes {stable_mosaic.version = 11 : i64} {
  func.func @_encoder_block_kernel(%arg0: i32, %arg1: memref<16x32xf32, #tpu.memory_space<vmem>>, %arg2: memref<16x32xf32, #tpu.memory_space<vmem>>, %arg3: memref<1x1x16xf32, #tpu.memory_space<vmem>>, %arg4: memref<32x32xf32, #tpu.memory_space<vmem>>, %arg5: memref<32x32xf32, #tpu.memory_space<vmem>>, %arg6: memref<32x32xf32, #tpu.memory_space<vmem>>, %arg7: memref<4x8x32xf32, #tpu.memory_space<vmem>>, %arg8: memref<6x32xf32, #tpu.memory_space<vmem>>, %arg9: memref<32x128xf32, #tpu.memory_space<vmem>>, %arg10: memref<1x128xf32, #tpu.memory_space<vmem>>, %arg11: memref<128x32xf32, #tpu.memory_space<vmem>>, %arg12: memref<16x32xf32, #tpu.memory_space<vmem>>) attributes {dimension_semantics = [#tpu.dimension_semantics<parallel>], iteration_bounds = array<i64: 2>, scalar_prefetch = 0 : i64, scratch_operands = 0 : i64, tpu.core_type = #tpu.core_type<tc>, window_params = [{transform_indices = @transform_0, window_bounds = array<i64: 16, 32>}, {transform_indices = @transform_1, window_bounds = array<i64: 16, 32>}, {transform_indices = @transform_2, window_bounds = array<i64: 1, 1, 16>}, {pipeline_mode = #tpu.pipeline_mode<synchronous>, transform_indices = @transform_3, window_bounds = array<i64: 32, 32>}, {pipeline_mode = #tpu.pipeline_mode<synchronous>, transform_indices = @transform_4, window_bounds = array<i64: 32, 32>}, {pipeline_mode = #tpu.pipeline_mode<synchronous>, transform_indices = @transform_5, window_bounds = array<i64: 32, 32>}, {pipeline_mode = #tpu.pipeline_mode<synchronous>, transform_indices = @transform_6, window_bounds = array<i64: 4, 8, 32>}, {pipeline_mode = #tpu.pipeline_mode<synchronous>, transform_indices = @transform_7, window_bounds = array<i64: 6, 32>}, {pipeline_mode = #tpu.pipeline_mode<synchronous>, transform_indices = @transform_8, window_bounds = array<i64: 32, 128>}, {pipeline_mode = #tpu.pipeline_mode<synchronous>, transform_indices = @transform_9, window_bounds = array<i64: 1, 128>}, {pipeline_mode = #tpu.pipeline_mode<synchronous>, transform_indices = @transform_10, window_bounds = array<i64: 128, 32>}, {transform_indices = @transform_11, window_bounds = array<i64: 16, 32>}]} {
    %c0 = arith.constant 0 : index
    %c0_0 = arith.constant 0 : index
    %0 = vector.load %arg2[%c0, %c0_0] : memref<16x32xf32, #tpu.memory_space<vmem>>, vector<16x32xf32>
    %c0_1 = arith.constant 0 : index
    %c0_2 = arith.constant 0 : index
    %1 = vector.load %arg1[%c0_1, %c0_2] : memref<16x32xf32, #tpu.memory_space<vmem>>, vector<16x32xf32>
    %c0_3 = arith.constant 0 : index
    %c0_4 = arith.constant 0 : index
    %2 = vector.load %arg4[%c0_3, %c0_4] : memref<32x32xf32, #tpu.memory_space<vmem>>, vector<32x32xf32>
    %cst = arith.constant dense<0.000000e+00> : vector<16x32xf32>
    %3 = tpu.matmul %0, %2, %cst {dimension_numbers = #tpu.dot_dimension_numbers<[1], [0], [0], [1], [0, 0, 1, 1], [], []>} : vector<16x32xf32>, vector<32x32xf32>, vector<16x32xf32> -> vector<16x32xf32>
    %4 = vector.shape_cast %3 : vector<16x32xf32> to vector<1x16x32xf32>
    %c0_5 = arith.constant 0 : index
    %c0_6 = arith.constant 0 : index
    %5 = vector.load %arg5[%c0_5, %c0_6] : memref<32x32xf32, #tpu.memory_space<vmem>>, vector<32x32xf32>
    %cst_7 = arith.constant dense<0.000000e+00> : vector<16x32xf32>
    %6 = tpu.matmul %0, %5, %cst_7 {dimension_numbers = #tpu.dot_dimension_numbers<[1], [0], [0], [1], [0, 0, 1, 1], [], []>} : vector<16x32xf32>, vector<32x32xf32>, vector<16x32xf32> -> vector<16x32xf32>
    %7 = vector.shape_cast %6 : vector<16x32xf32> to vector<1x16x32xf32>
    %c0_8 = arith.constant 0 : index
    %c0_9 = arith.constant 0 : index
    %8 = vector.load %arg6[%c0_8, %c0_9] : memref<32x32xf32, #tpu.memory_space<vmem>>, vector<32x32xf32>
    %cst_10 = arith.constant dense<0.000000e+00> : vector<16x32xf32>
    %9 = tpu.matmul %1, %8, %cst_10 {dimension_numbers = #tpu.dot_dimension_numbers<[1], [0], [0], [1], [0, 0, 1, 1], [], []>} : vector<16x32xf32>, vector<32x32xf32>, vector<16x32xf32> -> vector<16x32xf32>
    %10 = vector.shape_cast %9 : vector<16x32xf32> to vector<1x16x32xf32>
    %c0_11 = arith.constant 0 : index
    %c0_12 = arith.constant 0 : index
    %c0_13 = arith.constant 0 : index
    %11 = vector.load %arg3[%c0_11, %c0_12, %c0_13] : memref<1x1x16xf32, #tpu.memory_space<vmem>>, vector<1x1x16xf32>
    %cst_14 = arith.constant 0.000000e+00 : f32
    %12 = vector.broadcast %cst_14 : f32 to vector<1x1x16xf32>
    %13 = arith.cmpf oeq, %11, %12 : vector<1x1x16xf32>
    %14 = vector.shape_cast %13 : vector<1x1x16xi1> to vector<1x1x16xi1>
    %15 = vector.broadcast %14 : vector<1x1x16xi1> to vector<1x16x16xi1>
    %c0_15 = arith.constant 0 : index
    %c0_16 = arith.constant 0 : index
    %16 = vector.load %arg8[%c0_15, %c0_16] : memref<6x32xf32, #tpu.memory_space<vmem>>, vector<6x32xf32>
    %17 = vector.extract_strided_slice %16 {offsets = [0, 0], sizes = [1, 32], strides = [1, 1]} : vector<6x32xf32> to vector<1x32xf32>
    %18 = vector.extract_strided_slice %16 {offsets = [1, 0], sizes = [1, 32], strides = [1, 1]} : vector<6x32xf32> to vector<1x32xf32>
    %19 = vector.extract_strided_slice %16 {offsets = [2, 0], sizes = [1, 32], strides = [1, 1]} : vector<6x32xf32> to vector<1x32xf32>
    %20 = vector.extract_strided_slice %16 {offsets = [3, 0], sizes = [1, 32], strides = [1, 1]} : vector<6x32xf32> to vector<1x32xf32>
    %21 = vector.extract_strided_slice %16 {offsets = [4, 0], sizes = [1, 32], strides = [1, 1]} : vector<6x32xf32> to vector<1x32xf32>
    %22 = vector.extract_strided_slice %16 {offsets = [5, 0], sizes = [1, 32], strides = [1, 1]} : vector<6x32xf32> to vector<1x32xf32>
    %23 = vector.shape_cast %17 : vector<1x32xf32> to vector<1x32xf32>
    %24 = vector.broadcast %23 : vector<1x32xf32> to vector<16x32xf32>
    %25 = vector.extract_strided_slice %4 {offsets = [0, 0, 0], sizes = [1, 16, 8], strides = [1, 1, 1]} : vector<1x16x32xf32> to vector<1x16x8xf32>
    %26 = vector.extract_strided_slice %7 {offsets = [0, 0, 0], sizes = [1, 16, 8], strides = [1, 1, 1]} : vector<1x16x32xf32> to vector<1x16x8xf32>
    %27 = vector.extract_strided_slice %10 {offsets = [0, 0, 0], sizes = [1, 16, 8], strides = [1, 1, 1]} : vector<1x16x32xf32> to vector<1x16x8xf32>
    "tpu.trace_start"() <{level = 10 : i32, message = "bqd,bkd->bqk"}> : () -> ()
    %cst_17 = arith.constant dense<0.000000e+00> : vector<1x16x16xf32>
    %28 = tpu.matmul %25, %26, %cst_17 {dimension_numbers = #tpu.dot_dimension_numbers<[2], [2], [1], [1], [0, 0, 0, 1, 1, 1], [0], [0]>} : vector<1x16x8xf32>, vector<1x16x8xf32>, vector<1x16x16xf32> -> vector<1x16x16xf32>
    %cst_18 = arith.constant -1.000000e+20 : f32
    "tpu.trace_stop"() : () -> ()
    %29 = vector.broadcast %cst_18 : f32 to vector<1x16x16xf32>
    %30 = arith.select %15, %29, %28 : vector<1x16x16xi1>, vector<1x16x16xf32>
    %cst_19 = arith.constant dense<0xFF800000> : vector<1x16xf32>
    %31 = vector.multi_reduction <maximumf>, %30, %cst_19 [2] : vector<1x16x16xf32> to vector<1x16xf32>
    %32 = vector.shape_cast %31 : vector<1x16xf32> to vector<1x16x1xf32>
    %33 = vector.broadcast %32 : vector<1x16x1xf32> to vector<1x16x16xf32>
    %34 = arith.subf %30, %33 : vector<1x16x16xf32>
    %35 = math.exp %34 : vector<1x16x16xf32>
    %cst_20 = arith.constant dense<0.000000e+00> : vector<1x16xf32>
    %36 = vector.multi_reduction <add>, %35, %cst_20 [2] : vector<1x16x16xf32> to vector<1x16xf32>
    %37 = vector.shape_cast %36 : vector<1x16xf32> to vector<1x16x1xf32>
    %38 = tpu.reciprocal %37 {approx = true} : vector<1x16x1xf32> -> vector<1x16x1xf32>
    %39 = arith.mulf %37, %38 : vector<1x16x1xf32>
    %cst_21 = arith.constant 2.000000e+00 : f32
    %40 = vector.broadcast %cst_21 : f32 to vector<1x16x1xf32>
    %41 = arith.subf %40, %39 : vector<1x16x1xf32>
    %42 = arith.mulf %38, %41 : vector<1x16x1xf32>
    "tpu.trace_start"() <{level = 10 : i32, message = "bqk,bkd->bqd"}> : () -> ()
    %cst_22 = arith.constant dense<0.000000e+00> : vector<1x16x8xf32>
    %43 = tpu.matmul %35, %27, %cst_22 {dimension_numbers = #tpu.dot_dimension_numbers<[2], [1], [1], [2], [0, 0, 0, 1, 1, 2], [0], [0]>} : vector<1x16x16xf32>, vector<1x16x8xf32>, vector<1x16x8xf32> -> vector<1x16x8xf32>
    "tpu.trace_stop"() : () -> ()
    %44 = vector.broadcast %42 : vector<1x16x1xf32> to vector<1x16x8xf32>
    %45 = arith.mulf %43, %44 : vector<1x16x8xf32>
    %46 = vector.shape_cast %45 : vector<1x16x8xf32> to vector<16x8xf32>
    %c0_23 = arith.constant 0 : index
    %c0_24 = arith.constant 0 : index
    %c0_25 = arith.constant 0 : index
    %47 = vector.load %arg7[%c0_23, %c0_24, %c0_25] : memref<4x8x32xf32, #tpu.memory_space<vmem>>, vector<1x8x32xf32>
    %48 = vector.shape_cast %47 : vector<1x8x32xf32> to vector<8x32xf32>
    %cst_26 = arith.constant dense<0.000000e+00> : vector<16x32xf32>
    %49 = tpu.matmul %46, %48, %cst_26 {dimension_numbers = #tpu.dot_dimension_numbers<[1], [0], [0], [1], [0, 0, 1, 1], [], []>} : vector<16x8xf32>, vector<8x32xf32>, vector<16x32xf32> -> vector<16x32xf32>
    %50 = arith.addf %24, %49 : vector<16x32xf32>
    %51 = vector.extract_strided_slice %4 {offsets = [0, 0, 8], sizes = [1, 16, 8], strides = [1, 1, 1]} : vector<1x16x32xf32> to vector<1x16x8xf32>
    %52 = vector.extract_strided_slice %7 {offsets = [0, 0, 8], sizes = [1, 16, 8], strides = [1, 1, 1]} : vector<1x16x32xf32> to vector<1x16x8xf32>
    %53 = vector.extract_strided_slice %10 {offsets = [0, 0, 8], sizes = [1, 16, 8], strides = [1, 1, 1]} : vector<1x16x32xf32> to vector<1x16x8xf32>
    "tpu.trace_start"() <{level = 10 : i32, message = "bqd,bkd->bqk"}> : () -> ()
    %cst_27 = arith.constant dense<0.000000e+00> : vector<1x16x16xf32>
    %54 = tpu.matmul %51, %52, %cst_27 {dimension_numbers = #tpu.dot_dimension_numbers<[2], [2], [1], [1], [0, 0, 0, 1, 1, 1], [0], [0]>} : vector<1x16x8xf32>, vector<1x16x8xf32>, vector<1x16x16xf32> -> vector<1x16x16xf32>
    %cst_28 = arith.constant -1.000000e+20 : f32
    "tpu.trace_stop"() : () -> ()
    %55 = vector.broadcast %cst_28 : f32 to vector<1x16x16xf32>
    %56 = arith.select %15, %55, %54 : vector<1x16x16xi1>, vector<1x16x16xf32>
    %cst_29 = arith.constant dense<0xFF800000> : vector<1x16xf32>
    %57 = vector.multi_reduction <maximumf>, %56, %cst_29 [2] : vector<1x16x16xf32> to vector<1x16xf32>
    %58 = vector.shape_cast %57 : vector<1x16xf32> to vector<1x16x1xf32>
    %59 = vector.broadcast %58 : vector<1x16x1xf32> to vector<1x16x16xf32>
    %60 = arith.subf %56, %59 : vector<1x16x16xf32>
    %61 = math.exp %60 : vector<1x16x16xf32>
    %cst_30 = arith.constant dense<0.000000e+00> : vector<1x16xf32>
    %62 = vector.multi_reduction <add>, %61, %cst_30 [2] : vector<1x16x16xf32> to vector<1x16xf32>
    %63 = vector.shape_cast %62 : vector<1x16xf32> to vector<1x16x1xf32>
    %64 = tpu.reciprocal %63 {approx = true} : vector<1x16x1xf32> -> vector<1x16x1xf32>
    %65 = arith.mulf %63, %64 : vector<1x16x1xf32>
    %cst_31 = arith.constant 2.000000e+00 : f32
    %66 = vector.broadcast %cst_31 : f32 to vector<1x16x1xf32>
    %67 = arith.subf %66, %65 : vector<1x16x1xf32>
    %68 = arith.mulf %64, %67 : vector<1x16x1xf32>
    "tpu.trace_start"() <{level = 10 : i32, message = "bqk,bkd->bqd"}> : () -> ()
    %cst_32 = arith.constant dense<0.000000e+00> : vector<1x16x8xf32>
    %69 = tpu.matmul %61, %53, %cst_32 {dimension_numbers = #tpu.dot_dimension_numbers<[2], [1], [1], [2], [0, 0, 0, 1, 1, 2], [0], [0]>} : vector<1x16x16xf32>, vector<1x16x8xf32>, vector<1x16x8xf32> -> vector<1x16x8xf32>
    "tpu.trace_stop"() : () -> ()
    %70 = vector.broadcast %68 : vector<1x16x1xf32> to vector<1x16x8xf32>
    %71 = arith.mulf %69, %70 : vector<1x16x8xf32>
    %72 = vector.shape_cast %71 : vector<1x16x8xf32> to vector<16x8xf32>
    %c1 = arith.constant 1 : index
    %c0_33 = arith.constant 0 : index
    %c0_34 = arith.constant 0 : index
    %73 = vector.load %arg7[%c1, %c0_33, %c0_34] : memref<4x8x32xf32, #tpu.memory_space<vmem>>, vector<1x8x32xf32>
    %74 = vector.shape_cast %73 : vector<1x8x32xf32> to vector<8x32xf32>
    %cst_35 = arith.constant dense<0.000000e+00> : vector<16x32xf32>
    %75 = tpu.matmul %72, %74, %cst_35 {dimension_numbers = #tpu.dot_dimension_numbers<[1], [0], [0], [1], [0, 0, 1, 1], [], []>} : vector<16x8xf32>, vector<8x32xf32>, vector<16x32xf32> -> vector<16x32xf32>
    %76 = arith.addf %50, %75 : vector<16x32xf32>
    %77 = vector.extract_strided_slice %4 {offsets = [0, 0, 16], sizes = [1, 16, 8], strides = [1, 1, 1]} : vector<1x16x32xf32> to vector<1x16x8xf32>
    %78 = vector.extract_strided_slice %7 {offsets = [0, 0, 16], sizes = [1, 16, 8], strides = [1, 1, 1]} : vector<1x16x32xf32> to vector<1x16x8xf32>
    %79 = vector.extract_strided_slice %10 {offsets = [0, 0, 16], sizes = [1, 16, 8], strides = [1, 1, 1]} : vector<1x16x32xf32> to vector<1x16x8xf32>
    "tpu.trace_start"() <{level = 10 : i32, message = "bqd,bkd->bqk"}> : () -> ()
    %cst_36 = arith.constant dense<0.000000e+00> : vector<1x16x16xf32>
    %80 = tpu.matmul %77, %78, %cst_36 {dimension_numbers = #tpu.dot_dimension_numbers<[2], [2], [1], [1], [0, 0, 0, 1, 1, 1], [0], [0]>} : vector<1x16x8xf32>, vector<1x16x8xf32>, vector<1x16x16xf32> -> vector<1x16x16xf32>
    %cst_37 = arith.constant -1.000000e+20 : f32
    "tpu.trace_stop"() : () -> ()
    %81 = vector.broadcast %cst_37 : f32 to vector<1x16x16xf32>
    %82 = arith.select %15, %81, %80 : vector<1x16x16xi1>, vector<1x16x16xf32>
    %cst_38 = arith.constant dense<0xFF800000> : vector<1x16xf32>
    %83 = vector.multi_reduction <maximumf>, %82, %cst_38 [2] : vector<1x16x16xf32> to vector<1x16xf32>
    %84 = vector.shape_cast %83 : vector<1x16xf32> to vector<1x16x1xf32>
    %85 = vector.broadcast %84 : vector<1x16x1xf32> to vector<1x16x16xf32>
    %86 = arith.subf %82, %85 : vector<1x16x16xf32>
    %87 = math.exp %86 : vector<1x16x16xf32>
    %cst_39 = arith.constant dense<0.000000e+00> : vector<1x16xf32>
    %88 = vector.multi_reduction <add>, %87, %cst_39 [2] : vector<1x16x16xf32> to vector<1x16xf32>
    %89 = vector.shape_cast %88 : vector<1x16xf32> to vector<1x16x1xf32>
    %90 = tpu.reciprocal %89 {approx = true} : vector<1x16x1xf32> -> vector<1x16x1xf32>
    %91 = arith.mulf %89, %90 : vector<1x16x1xf32>
    %cst_40 = arith.constant 2.000000e+00 : f32
    %92 = vector.broadcast %cst_40 : f32 to vector<1x16x1xf32>
    %93 = arith.subf %92, %91 : vector<1x16x1xf32>
    %94 = arith.mulf %90, %93 : vector<1x16x1xf32>
    "tpu.trace_start"() <{level = 10 : i32, message = "bqk,bkd->bqd"}> : () -> ()
    %cst_41 = arith.constant dense<0.000000e+00> : vector<1x16x8xf32>
    %95 = tpu.matmul %87, %79, %cst_41 {dimension_numbers = #tpu.dot_dimension_numbers<[2], [1], [1], [2], [0, 0, 0, 1, 1, 2], [0], [0]>} : vector<1x16x16xf32>, vector<1x16x8xf32>, vector<1x16x8xf32> -> vector<1x16x8xf32>
    "tpu.trace_stop"() : () -> ()
    %96 = vector.broadcast %94 : vector<1x16x1xf32> to vector<1x16x8xf32>
    %97 = arith.mulf %95, %96 : vector<1x16x8xf32>
    %98 = vector.shape_cast %97 : vector<1x16x8xf32> to vector<16x8xf32>
    %c2 = arith.constant 2 : index
    %c0_42 = arith.constant 0 : index
    %c0_43 = arith.constant 0 : index
    %99 = vector.load %arg7[%c2, %c0_42, %c0_43] : memref<4x8x32xf32, #tpu.memory_space<vmem>>, vector<1x8x32xf32>
    %100 = vector.shape_cast %99 : vector<1x8x32xf32> to vector<8x32xf32>
    %cst_44 = arith.constant dense<0.000000e+00> : vector<16x32xf32>
    %101 = tpu.matmul %98, %100, %cst_44 {dimension_numbers = #tpu.dot_dimension_numbers<[1], [0], [0], [1], [0, 0, 1, 1], [], []>} : vector<16x8xf32>, vector<8x32xf32>, vector<16x32xf32> -> vector<16x32xf32>
    %102 = arith.addf %76, %101 : vector<16x32xf32>
    %103 = vector.extract_strided_slice %4 {offsets = [0, 0, 24], sizes = [1, 16, 8], strides = [1, 1, 1]} : vector<1x16x32xf32> to vector<1x16x8xf32>
    %104 = vector.extract_strided_slice %7 {offsets = [0, 0, 24], sizes = [1, 16, 8], strides = [1, 1, 1]} : vector<1x16x32xf32> to vector<1x16x8xf32>
    %105 = vector.extract_strided_slice %10 {offsets = [0, 0, 24], sizes = [1, 16, 8], strides = [1, 1, 1]} : vector<1x16x32xf32> to vector<1x16x8xf32>
    "tpu.trace_start"() <{level = 10 : i32, message = "bqd,bkd->bqk"}> : () -> ()
    %cst_45 = arith.constant dense<0.000000e+00> : vector<1x16x16xf32>
    %106 = tpu.matmul %103, %104, %cst_45 {dimension_numbers = #tpu.dot_dimension_numbers<[2], [2], [1], [1], [0, 0, 0, 1, 1, 1], [0], [0]>} : vector<1x16x8xf32>, vector<1x16x8xf32>, vector<1x16x16xf32> -> vector<1x16x16xf32>
    %cst_46 = arith.constant -1.000000e+20 : f32
    "tpu.trace_stop"() : () -> ()
    %107 = vector.broadcast %cst_46 : f32 to vector<1x16x16xf32>
    %108 = arith.select %15, %107, %106 : vector<1x16x16xi1>, vector<1x16x16xf32>
    %cst_47 = arith.constant dense<0xFF800000> : vector<1x16xf32>
    %109 = vector.multi_reduction <maximumf>, %108, %cst_47 [2] : vector<1x16x16xf32> to vector<1x16xf32>
    %110 = vector.shape_cast %109 : vector<1x16xf32> to vector<1x16x1xf32>
    %111 = vector.broadcast %110 : vector<1x16x1xf32> to vector<1x16x16xf32>
    %112 = arith.subf %108, %111 : vector<1x16x16xf32>
    %113 = math.exp %112 : vector<1x16x16xf32>
    %cst_48 = arith.constant dense<0.000000e+00> : vector<1x16xf32>
    %114 = vector.multi_reduction <add>, %113, %cst_48 [2] : vector<1x16x16xf32> to vector<1x16xf32>
    %115 = vector.shape_cast %114 : vector<1x16xf32> to vector<1x16x1xf32>
    %116 = tpu.reciprocal %115 {approx = true} : vector<1x16x1xf32> -> vector<1x16x1xf32>
    %117 = arith.mulf %115, %116 : vector<1x16x1xf32>
    %cst_49 = arith.constant 2.000000e+00 : f32
    %118 = vector.broadcast %cst_49 : f32 to vector<1x16x1xf32>
    %119 = arith.subf %118, %117 : vector<1x16x1xf32>
    %120 = arith.mulf %116, %119 : vector<1x16x1xf32>
    "tpu.trace_start"() <{level = 10 : i32, message = "bqk,bkd->bqd"}> : () -> ()
    %cst_50 = arith.constant dense<0.000000e+00> : vector<1x16x8xf32>
    %121 = tpu.matmul %113, %105, %cst_50 {dimension_numbers = #tpu.dot_dimension_numbers<[2], [1], [1], [2], [0, 0, 0, 1, 1, 2], [0], [0]>} : vector<1x16x16xf32>, vector<1x16x8xf32>, vector<1x16x8xf32> -> vector<1x16x8xf32>
    "tpu.trace_stop"() : () -> ()
    %122 = vector.broadcast %120 : vector<1x16x1xf32> to vector<1x16x8xf32>
    %123 = arith.mulf %121, %122 : vector<1x16x8xf32>
    %124 = vector.shape_cast %123 : vector<1x16x8xf32> to vector<16x8xf32>
    %c3 = arith.constant 3 : index
    %c0_51 = arith.constant 0 : index
    %c0_52 = arith.constant 0 : index
    %125 = vector.load %arg7[%c3, %c0_51, %c0_52] : memref<4x8x32xf32, #tpu.memory_space<vmem>>, vector<1x8x32xf32>
    %126 = vector.shape_cast %125 : vector<1x8x32xf32> to vector<8x32xf32>
    %cst_53 = arith.constant dense<0.000000e+00> : vector<16x32xf32>
    %127 = tpu.matmul %124, %126, %cst_53 {dimension_numbers = #tpu.dot_dimension_numbers<[1], [0], [0], [1], [0, 0, 1, 1], [], []>} : vector<16x8xf32>, vector<8x32xf32>, vector<16x32xf32> -> vector<16x32xf32>
    %128 = arith.addf %102, %127 : vector<16x32xf32>
    %129 = arith.addf %128, %0 : vector<16x32xf32>
    %cst_54 = arith.constant dense<0.000000e+00> : vector<16xf32>
    %130 = vector.multi_reduction <add>, %129, %cst_54 [1] : vector<16x32xf32> to vector<16xf32>
    %131 = vector.shape_cast %130 : vector<16xf32> to vector<16x1xf32>
    %cst_55 = arith.constant 3.200000e+01 : f32
    %132 = vector.broadcast %cst_55 : f32 to vector<16x1xf32>
    %133 = arith.divf %131, %132 : vector<16x1xf32>
    %134 = vector.broadcast %133 : vector<16x1xf32> to vector<16x32xf32>
    %135 = arith.subf %129, %134 : vector<16x32xf32>
    %136 = arith.mulf %135, %135 : vector<16x32xf32>
    %cst_56 = arith.constant dense<0.000000e+00> : vector<16xf32>
    %137 = vector.multi_reduction <add>, %136, %cst_56 [1] : vector<16x32xf32> to vector<16xf32>
    %138 = vector.shape_cast %137 : vector<16xf32> to vector<16x1xf32>
    %cst_57 = arith.constant 3.200000e+01 : f32
    %139 = vector.broadcast %cst_57 : f32 to vector<16x1xf32>
    %140 = arith.divf %138, %139 : vector<16x1xf32>
    %141 = vector.broadcast %133 : vector<16x1xf32> to vector<16x32xf32>
    %142 = arith.subf %129, %141 : vector<16x32xf32>
    %cst_58 = arith.constant 9.99999974E-6 : f32
    %143 = vector.broadcast %cst_58 : f32 to vector<16x1xf32>
    %144 = arith.addf %140, %143 : vector<16x1xf32>
    %145 = math.rsqrt %144 : vector<16x1xf32>
    %146 = vector.broadcast %145 : vector<16x1xf32> to vector<16x32xf32>
    %147 = arith.mulf %142, %146 : vector<16x32xf32>
    %148 = vector.broadcast %18 : vector<1x32xf32> to vector<16x32xf32>
    %149 = arith.mulf %147, %148 : vector<16x32xf32>
    %150 = vector.broadcast %19 : vector<1x32xf32> to vector<16x32xf32>
    %151 = arith.addf %149, %150 : vector<16x32xf32>
    %c0_59 = arith.constant 0 : index
    %c0_60 = arith.constant 0 : index
    %152 = vector.load %arg9[%c0_59, %c0_60] : memref<32x128xf32, #tpu.memory_space<vmem>>, vector<32x128xf32>
    %cst_61 = arith.constant dense<0.000000e+00> : vector<16x128xf32>
    %153 = tpu.matmul %151, %152, %cst_61 {dimension_numbers = #tpu.dot_dimension_numbers<[1], [0], [0], [1], [0, 0, 1, 1], [], []>} : vector<16x32xf32>, vector<32x128xf32>, vector<16x128xf32> -> vector<16x128xf32>
    %c0_62 = arith.constant 0 : index
    %c0_63 = arith.constant 0 : index
    %154 = vector.load %arg10[%c0_62, %c0_63] : memref<1x128xf32, #tpu.memory_space<vmem>>, vector<1x128xf32>
    %155 = vector.broadcast %154 : vector<1x128xf32> to vector<16x128xf32>
    %156 = arith.addf %153, %155 : vector<16x128xf32>
    %cst_64 = arith.constant 0.000000e+00 : f32
    %157 = vector.broadcast %cst_64 : f32 to vector<16x128xf32>
    %158 = arith.maximumf %156, %157 : vector<16x128xf32>
    %c0_65 = arith.constant 0 : index
    %c0_66 = arith.constant 0 : index
    %159 = vector.load %arg11[%c0_65, %c0_66] : memref<128x32xf32, #tpu.memory_space<vmem>>, vector<128x32xf32>
    %cst_67 = arith.constant dense<0.000000e+00> : vector<16x32xf32>
    %160 = tpu.matmul %158, %159, %cst_67 {dimension_numbers = #tpu.dot_dimension_numbers<[1], [0], [0], [1], [0, 0, 1, 1], [], []>} : vector<16x128xf32>, vector<128x32xf32>, vector<16x32xf32> -> vector<16x32xf32>
    %161 = vector.broadcast %20 : vector<1x32xf32> to vector<16x32xf32>
    %162 = arith.addf %160, %161 : vector<16x32xf32>
    %163 = arith.addf %162, %151 : vector<16x32xf32>
    %cst_68 = arith.constant dense<0.000000e+00> : vector<16xf32>
    %164 = vector.multi_reduction <add>, %163, %cst_68 [1] : vector<16x32xf32> to vector<16xf32>
    %165 = vector.shape_cast %164 : vector<16xf32> to vector<16x1xf32>
    %cst_69 = arith.constant 3.200000e+01 : f32
    %166 = vector.broadcast %cst_69 : f32 to vector<16x1xf32>
    %167 = arith.divf %165, %166 : vector<16x1xf32>
    %168 = vector.broadcast %167 : vector<16x1xf32> to vector<16x32xf32>
    %169 = arith.subf %163, %168 : vector<16x32xf32>
    %170 = arith.mulf %169, %169 : vector<16x32xf32>
    %cst_70 = arith.constant dense<0.000000e+00> : vector<16xf32>
    %171 = vector.multi_reduction <add>, %170, %cst_70 [1] : vector<16x32xf32> to vector<16xf32>
    %172 = vector.shape_cast %171 : vector<16xf32> to vector<16x1xf32>
    %cst_71 = arith.constant 3.200000e+01 : f32
    %173 = vector.broadcast %cst_71 : f32 to vector<16x1xf32>
    %174 = arith.divf %172, %173 : vector<16x1xf32>
    %175 = vector.broadcast %167 : vector<16x1xf32> to vector<16x32xf32>
    %176 = arith.subf %163, %175 : vector<16x32xf32>
    %cst_72 = arith.constant 9.99999974E-6 : f32
    %177 = vector.broadcast %cst_72 : f32 to vector<16x1xf32>
    %178 = arith.addf %174, %177 : vector<16x1xf32>
    %179 = math.rsqrt %178 : vector<16x1xf32>
    %180 = vector.broadcast %179 : vector<16x1xf32> to vector<16x32xf32>
    %181 = arith.mulf %176, %180 : vector<16x32xf32>
    %182 = vector.broadcast %21 : vector<1x32xf32> to vector<16x32xf32>
    %183 = arith.mulf %181, %182 : vector<16x32xf32>
    %184 = vector.broadcast %22 : vector<1x32xf32> to vector<16x32xf32>
    %185 = arith.addf %183, %184 : vector<16x32xf32>
    %c0_73 = arith.constant 0 : index
    %c0_74 = arith.constant 0 : index
    %186 = vector.load %arg12[%c0_73, %c0_74] : memref<16x32xf32, #tpu.memory_space<vmem>>, vector<16x32xf32>
    tpu.vector_store %arg12[%c0_73, %c0_74], %185 {strides = array<i32>} : memref<16x32xf32, #tpu.memory_space<vmem>>, vector<16x32xf32>,
    return
  }
  func.func @transform_0(%arg0: i32) -> (i32, i32) {
    %c0_i32 = arith.constant 0 : i32
    %c0_i32_0 = arith.constant 0 : i32
    return %arg0, %c0_i32 : i32, i32
  }
  func.func @transform_1(%arg0: i32) -> (i32, i32) {
    %c0_i32 = arith.constant 0 : i32
    %c0_i32_0 = arith.constant 0 : i32
    return %arg0, %c0_i32 : i32, i32
  }
  func.func @transform_2(%arg0: i32) -> (i32, i32, i32) {
    %c0_i32 = arith.constant 0 : i32
    %c0_i32_0 = arith.constant 0 : i32
    %c0_i32_1 = arith.constant 0 : i32
    return %arg0, %c0_i32, %c0_i32_0 : i32, i32, i32
  }
  func.func @transform_3(%arg0: i32) -> (i32, i32) {
    %c0_i32 = arith.constant 0 : i32
    %c0_i32_0 = arith.constant 0 : i32
    %c0_i32_1 = arith.constant 0 : i32
    return %c0_i32, %c0_i32_0 : i32, i32
  }
  func.func @transform_4(%arg0: i32) -> (i32, i32) {
    %c0_i32 = arith.constant 0 : i32
    %c0_i32_0 = arith.constant 0 : i32
    %c0_i32_1 = arith.constant 0 : i32
    return %c0_i32, %c0_i32_0 : i32, i32
  }
  func.func @transform_5(%arg0: i32) -> (i32, i32) {
    %c0_i32 = arith.constant 0 : i32
    %c0_i32_0 = arith.constant 0 : i32
    %c0_i32_1 = arith.constant 0 : i32
    return %c0_i32, %c0_i32_0 : i32, i32
  }
  func.func @transform_6(%arg0: i32) -> (i32, i32, i32) {
    %c0_i32 = arith.constant 0 : i32
    %c0_i32_0 = arith.constant 0 : i32
    %c0_i32_1 = arith.constant 0 : i32
    %c0_i32_2 = arith.constant 0 : i32
    return %c0_i32, %c0_i32_0, %c0_i32_1 : i32, i32, i32
  }
  func.func @transform_7(%arg0: i32) -> (i32, i32) {
    %c0_i32 = arith.constant 0 : i32
    %c0_i32_0 = arith.constant 0 : i32
    %c0_i32_1 = arith.constant 0 : i32
    return %c0_i32, %c0_i32_0 : i32, i32
  }
  func.func @transform_8(%arg0: i32) -> (i32, i32) {
    %c0_i32 = arith.constant 0 : i32
    %c0_i32_0 = arith.constant 0 : i32
    %c0_i32_1 = arith.constant 0 : i32
    return %c0_i32, %c0_i32_0 : i32, i32
  }
  func.func @transform_9(%arg0: i32) -> (i32, i32) {
    %c0_i32 = arith.constant 0 : i32
    %c0_i32_0 = arith.constant 0 : i32
    %c0_i32_1 = arith.constant 0 : i32
    return %c0_i32, %c0_i32_0 : i32, i32
  }
  func.func @transform_10(%arg0: i32) -> (i32, i32) {
    %c0_i32 = arith.constant 0 : i32
    %c0_i32_0 = arith.constant 0 : i32
    %c0_i32_1 = arith.constant 0 : i32
    return %c0_i32, %c0_i32_0 : i32, i32
  }
  func.func @transform_11(%arg0: i32) -> (i32, i32) {
    %c0_i32 = arith.constant 0 : i32
    %c0_i32_0 = arith.constant 0 : i32
    return %arg0, %c0_i32 : i32, i32
  }
}

</mosaic_0001>

<bundles_post_ra>
// kernel: encoder_forward.2
= control target key start
LH: loop header
LB: loop body
LE: loop exit
PB: predicated region body
PF: predicated region fallthrough
CT: control target
= control target key end

     0   :  { %s2629_s17 = smov 0   ;;  %s2973_s0 = inlined_call_operand.vmem [shape: f32[32,32], index: 0, kind: input, shape index: {}, may-alias: {0,1}]   ;;  %s2974_s1 = inlined_call_operand.vmem [shape: f32[32,32], index: 1, kind: input, shape index: {}, may-alias: {0,1}]   ;;  %s2975_s2 = inlined_call_operand.vmem [shape: f32[2,1,16], index: 2, kind: input, shape index: {}]   ;;  %s2976_s3 = inlined_call_operand.vmem [shape: f32[32,32], index: 3, kind: input, shape index: {}]   ;;  %s2977_s4 = inlined_call_operand.vmem [shape: f32[32,32], index: 4, kind: input, shape index: {}]   ;;  %s2978_s5 = inlined_call_operand.vmem [shape: f32[32,32], index: 5, kind: input, shape index: {}]   ;;  %s2979_s6 = inlined_call_operand.vmem [shape: f32[4,8,32], index: 6, kind: input, shape index: {}]   ;;  %s2980_s7 = inlined_call_operand.vmem [shape: f32[6,32], index: 7, kind: input, shape index: {}]   ;;  %s2981_s8 = inlined_call_operand.vmem [shape: f32[32,128], index: 8, kind: input, shape index: {}]   ;;  %s2982_s9 = inlined_call_operand.vmem [shape: f32[1,128], index: 9, kind: input, shape index: {}]   ;;  %s2983_s10 = inlined_call_operand.vmem [shape: f32[128,32], index: 10, kind: input, shape index: {}]   ;;  %s2984_s11 = inlined_call_operand.vmem [shape: f32[32,32], index: 11, kind: output, shape index: {}]  }
   0x1 LB: > { %s2635_s18 = sadd.s32 4294967295, %s2563_s17   ;;  %p2211_p0 = scmp.ge.s32.totalorder %s2563_s17, 1  ;;  %s2563_s17 = sphi %s2629_s17, %s21_s17  }
   0x2   : > { %p357_p1 = scmp.lt.s32.totalorder %s2563_s17, 3 }
   0x4   : > { %p358_p2 = pnand %p2211_p0, %p357_p1 }
   0x5   : > { %s2212_s23 = sshll.u32 (!%p358_p2), %s2635_s18, 1  ;;  %p417_p4 = scmp.lt.s32.totalorder (!%p358_p2), %s2635_s18, 1 }
   0x6   : > { %361 = sbr.rel (%p358_p2) target bundleno = 2964 (0xb94), region = 64  ;;  %p406_p3 = scmp.lt.s32.totalorder (!%p358_p2), %s2212_s23, 3 }
   0x7   : > { %s2568_s24 = smov (!%p358_p2), 104  }
   0xb   : > { %v433_v0 = vld [vmem:[%s2976_s3 + $0x18] sm:$0xff]  ;;  %v432_v1 = vld [vmem:[%s2976_s3 + $0x10] sm:$0xff]  ;;  %v431_v2 = vld [vmem:[%s2976_s3 + $0x8] sm:$0xff]  ;;  %s2986_s23 = smov (!%p406_p3, %s2212_s23), 3  ;;  %vm434_vm0 = vcmask 261120   ;;  %vm693_vm1 = vcmask 64512   ;;  %v683_v20 = vlaneseq }
   0xc   : > { %2350 = vmatprep.subr.mxu0 %v433_v0  ;;  %v430_v3 = vld [vmem:[%s2976_s3] sm:$0xff]  ;;  %s2652_s28 = sshll.u32 %s2986_s23, 3  ;;  %v519_v4 = vld [vmem:[%s2977_s4 + $0x18] sm:$0xff]  ;;  %v518_v7 = vld [vmem:[%s2977_s4 + $0x10] sm:$0xff]  ;;  %s2988_s18 = smov (!%p417_p4, %s2635_s18), 1  ;;  %v2565_v24 = vmov 0  }
   0xd   : > { %2351 = vmatpush3.msra.mxu0 %v433_v0  ;;  %s415_s12 = scalar_lea.vmem %s2974_s1, %s2652_s28  ;;  %v517_v8 = vld [vmem:[%s2977_s4 + $0x8] sm:$0xff]  ;;  %v516_v9 = vld [vmem:[%s2977_s4] sm:$0xff]  ;;  %v598_v10 = vld [vmem:[%s2978_s5 + $0x18] sm:$0xff]  ;;  %s409_s30 = scalar_lea.vmem %s2973_s0, %s2652_s28  ;;  %v2725_v22 = vshrl.u32 %v683_v20, 7  ;;  %vm783_vm4 = vcmask 130048  }
   0xe   : > { %2352 = vmatprep.subr.mxu0 %v432_v1  ;;  %v2661_v5 = vld [vmem:[%s415_s12] sm:$0xff]  ;;  %v2663_v6 = vld [vmem:[%s415_s12 + $0x8] sm:$0xff]  ;;  %v597_v11 = vld [vmem:[%s2978_s5 + $0x10] sm:$0xff]  ;;  %s419_s20 = scalar_lea.vmem %s2975_s2, %s2988_s18  ;;  %s2566_s18 = smov 120  }
   0xf   : > { %2353 = vmatpush3.msra.mxu0 %v432_v1  ;;  %2358 = vmatprep.mubr.msk.f32.mxu0 %vm434_vm0, %v2661_v5  ;;  %v428_v12 = vld [vmem:[%s409_s30] sm:$0xff]  ;;  %v596_v13 = vld [vmem:[%s2978_s5 + $0x8] sm:$0xff]  ;;  %v685_v23 = vsub.s32 0, %v2725_v22  ;;  %s2567_s23 = smov 112   ;;  %s424_s26 = scalar_lea.vmem %s2984_s11, %s2652_s28 }
  0x10   : > { %2354 = vmatprep.subr.mxu0 %v431_v2  ;;  %v595_v14 = vld [vmem:[%s2978_s5] sm:$0xff]  ;;  %v429_v15 = vld [vmem:[%s409_s30 + $0x8] sm:$0xff] }
  0x11   : > { %2355 = vmatpush3.msra.mxu0 %v431_v2  ;;  %v680_v21 = vld [vmem:[%s419_s20] sm:$0x1] }
  0x12   : > { %2356 = vmatprep.subr.mxu0 %v430_v3  ;;  %vm681_vm2 = vcmp.eq.f32.partialorder %v680_v21, 0.0  ;;  %v893_v35 = vld [vmem:[%s2979_s6] sm:$0xff] }
  0x13   : > { %2357 = vmatpush3.msra.mxu0 %v430_v3  ;;  %v682_v25 = vsel %vm681_vm2, 1, %v2565_v24 }
  0x14   : > { %2359 = vmatmul.mubr.msk.f32.vlgmr.msra.gmra.mxu0 %vm434_vm0, %v2663_v6  ;;  %2361 = vmatprep.subr.mxu0 %v519_v4  ;;  %v2730_v26 = vrot.slane %v682_v25, %v685_v23 }
  0x15   : > { %2362 = vmatpush3.msra.mxu0 %v519_v4  ;;  %2369 = vmatprep.mubr.msk.f32.mxu0 %vm434_vm0, %v2661_v5 }
  0x16   : > { %2363 = vmatprep.subr.mxu0 %v518_v7  ;;  %vm687_vm3 = vcmp.eq.s32.totalorder %v2730_v26, 1  ;;  %v2247_v26 = vld [vmem:[%s2979_s6 + $0x10] sm:$0xff] }
  0x17   : > { %2364 = vmatpush3.msra.mxu0 %v518_v7 }
  0x18   : > { %2365 = vmatprep.subr.mxu0 %v517_v8 }
  0x19   : > { %2366 = vmatpush3.msra.mxu0 %v517_v8 }
  0x1a   : > { %2367 = vmatprep.subr.mxu0 %v516_v9 }
  0x1b   : > { %2368 = vmatpush3.msra.mxu0 %v516_v9 }
  0x1c   : > { %2370 = vmatmul.mubr.msk.f32.vlgmr.msra.gmra.mxu0 %vm434_vm0, %v2663_v6  ;;  %2372 = vmatprep.subr.mxu0 %v598_v10 }
  0x1d   : > { %2373 = vmatpush3.msra.mxu0 %v598_v10  ;;  %2380 = vmatprep.mubr.msk.f32.mxu0 %vm434_vm0, %v428_v12 }
  0x1e   : > { %2374 = vmatprep.subr.mxu0 %v597_v11 }
  0x1f   : > { %2375 = vmatpush3.msra.mxu0 %v597_v11 }
  0x20   : > { %2376 = vmatprep.subr.mxu0 %v596_v13 }
  0x21   : > { %2377 = vmatpush3.msra.mxu0 %v596_v13 }
  0x22   : > { %2378 = vmatprep.subr.mxu0 %v595_v14 }
  0x23   : > { %2379 = vmatpush3.msra.mxu0 %v595_v14 }
  0x24   : > { %2381 = vmatmul.mubr.msk.f32.vlgmr.msra.gmra.mxu0 %vm434_vm0, %v429_v15 }
  0xd4   : > { %v2700_v16 = vpop.f32.mrf.mxu0 }
  0xd6   : > { %v2702_v17 = vpop.f32.mrf.mxu0 }
  0xd7   : > { %2387 = vmatprep.mubr.msk.f32.mxu1 %vm693_vm1, %v2702_v17 }
  0xdc   : > { %v2706_v18 = vpop.f32.mrf.mxu0 }
  0xdd   : > { %2383 = vmatprep.subr.msk.mxu1 %vm693_vm1, %v2706_v18 }
  0xde   : > { %v2710_v19 = vpop.f32.mrf.mxu0  ;;  %2384 = vmatpush3.xpose.msk.msra.mxu1 %vm693_vm1, %v2706_v18 }
  0xdf   : > { %2385 = vmatprep.subr.msk.mxu1 %vm693_vm1, %v2710_v19 }
  0xe2   : > { %2386 = vmatpush3.xpose.msk.msra.mxu1 %vm693_vm1, %v2710_v19 }
  0xe4   : > { %v2739_v33 = vpop.f32.mrf.mxu0 }
  0xe5   : > { %2388 = vmatmul.mubr.msk.f32.vlgmr.msra.gmra.mxu1 %vm693_vm1, %v2700_v16  ;;  %2390 = vmatprep.subr.mxu0 %v2739_v33 }
  0xe6   : > { %2391 = vmatpush3.msra.mxu0 %v2739_v33  ;;  %v2743_v34 = vpop.f32.mrf.mxu0 }
  0xe7   : > { %2392 = vmatprep.subr.mxu0 %v2743_v34 }
  0xe8   : > { %2393 = vmatpush3.msra.mxu0 %v2743_v34 }
  0xe9   : > { %2397 = vmatprep.subr.mxu0 %v893_v35 }
 0x1a5   : > { %v2389_v27 = vpop.f32.mrf.mxu1 }
 0x1a6   : > { %v782_v31 = vsel %vm687_vm3, -1e+20, %v2389_v27 }
 0x1a7   : > { %v772_v28 = vpop.f32.mrf.mxu1  ;;  %v787_v32 = vsel %vm783_vm4, %v782_v31, -inf }
 0x1a8   : > { %v781_v29 = vsel %vm687_vm3, -1e+20, %v772_v28 }
 0x1a9   : > { %v784_v30 = vsel %vm783_vm4, %v781_v29, -inf }
 0x1aa   : > { %785 = vmax.xlane.f32.xlu0 %v784_v30 }
 0x1ae   : > { %788 = vmax.xlane.f32.xlu0 %v787_v32 }
 0x1c4   : > { %983 = vrot.lane.b32.xlu0 %v2706_v18, %s2566_s18 }
 0x1c8   : > { %1278 = vrot.lane.b32.xlu0 %v2706_v18, %s2567_s23 }
 0x1cc   : > { %1272 = vrot.lane.b32.xlu0 %v2702_v17, %s2567_s23 }
 0x233   : > { %v786_v36 = vpop.xlane.xlu0 %785 }
 0x234   : > { %v790_v37 = vsub.f32 %v781_v29, %v786_v36 }
 0x236   : > { %v792_v38 = vmul.f32 1.442695, %v790_v37 }
 0x237   : > { %v789_v39 = vpop.xlane.xlu0 %788 }
 0x238   : > { %2517 = vpow2.f32 %v792_v38  ;;  %v791_v40 = vsub.f32 %v782_v31, %v789_v39 }
 0x23a   : > { %v794_v41 = vmul.f32 1.442695, %v791_v40 }
 0x23b   : > { %v984_v45 = vpop.permute.xlu0 %983 }
 0x23c   : > { %2519 = vpow2.f32 %v794_v41  ;;  %v2238_v41 = vld [vmem:[%s2979_s6 + $0x8] sm:$0xff] }
 0x23f   : > { %v1279_v63 = vpop.permute.xlu0 %1278 }
 0x243   : > { %v1273_v1 = vpop.permute.xlu0 %1272 }
 0x245   : > { %v2518_v42 = vpop.eup %2517 }
 0x246   : > { %2394 = vmatprep.mubr.msk.f32.mxu0 %vm783_vm4, %v2518_v42  ;;  %v796_v46 = vsel %vm783_vm4, %v2518_v42, 0.0 }
 0x249   : > { %v2520_v43 = vpop.eup %2519 }
 0x24a   : > { %2395 = vmatmul.mubr.msk.f32.vlgmr.msra.gmra.mxu0 %vm783_vm4, %v2520_v43  ;;  %v799_v44 = vsel %vm783_vm4, %v2520_v43, 0.0 }
 0x24b   : > { %2398 = vmatpush3.msra.mxu0 %v893_v35  ;;  %800 = vadd.xlane.f32.xlu1 %v799_v44 }
 0x24c   : > { %2402 = vmatprep.subr.msk.mxu0 %vm693_vm1, %v984_v45 }
 0x24f   : > { %797 = vadd.xlane.f32.xlu1 %v796_v46 }
 0x260   : > { %981 = vrot.lane.b32.xlu1 %v2710_v19, %s2566_s18 }
 0x264   : > { %977 = vrot.lane.b32.xlu1 %v2702_v17, %s2566_s18 }
 0x268   : > { %979 = vrot.lane.b32.xlu1 %v2700_v16, %s2566_s18 }
 0x26c   : > { %1276 = vrot.lane.b32.xlu1 %v2710_v19, %s2567_s23 }
 0x270   : > { %1274 = vrot.lane.b32.xlu1 %v2700_v16, %s2567_s23 }
 0x2d4   : > { %v801_v47 = vpop.xlane.xlu1 %800 }
 0x2d8   : > { %v798_v48 = vpop.xlane.xlu1 %797 }
 0x2d9   : > { %2521 = vrcp.f32 %v798_v48 }
 0x2da   : > { %2523 = vrcp.f32 %v801_v47 }
 0x2dc   : > { %v982_v54 = vpop.permute.xlu1 %981 }
 0x2e0   : > { %v978_v60 = vpop.permute.xlu1 %977 }
 0x2e4   : > { %v980_v0 = vpop.permute.xlu1 %979 }
 0x2e6   : > { %v2522_v49 = vpop.eup %2521 }
 0x2e7   : > { %v2524_v50 = vpop.eup %2523  ;;  %v804_v51 = vmul.f32 %v2522_v49, %v798_v48 }
 0x2e8   : > { %v805_v52 = vmul.f32 %v2524_v50, %v801_v47  ;;  %v1277_v2 = vpop.permute.xlu1 %1276 }
 0x2e9   : > { %v806_v53 = vsub.f32 2.0, %v804_v51 }
 0x2ea   : > { %v807_v55 = vsub.f32 2.0, %v805_v52 }
 0x2eb   : > { %v808_v57 = vmul.f32 %v2522_v49, %v806_v53 }
 0x2ec   : > { %v809_v58 = vmul.f32 %v2524_v50, %v807_v55  ;;  %v1275_v3 = vpop.permute.xlu1 %1274 }
 0x30a   : > { %v2396_v56 = vpop.f32.mrf.mxu0 }
 0x30b   : > { %v892_v62 = vmul.f32 %v2396_v56, %v809_v58 }
 0x30c   : > { %v882_v59 = vpop.f32.mrf.mxu0 }
 0x30d   : > { %v891_v61 = vmul.f32 %v882_v59, %v808_v57 }
 0x30f   : > { %2399 = vmatprep.mubr.msk.f32.mxu0 %vm693_vm1, %v891_v61 }
 0x310   : > { %2400 = vmatmul.mubr.msk.f32.vlgmr.msra.gmra.mxu0 %vm693_vm1, %v892_v62 }
 0x311   : > { %2403 = vmatpush3.xpose.msk.msra.mxu0 %vm693_vm1, %v984_v45  ;;  %2406 = vmatprep.mubr.msk.f32.mxu0 %vm693_vm1, %v978_v60 }
 0x312   : > { %2404 = vmatprep.subr.msk.mxu0 %vm693_vm1, %v982_v54 }
 0x315   : > { %2405 = vmatpush3.xpose.msk.msra.mxu0 %vm693_vm1, %v982_v54 }
 0x316   : > { %2421 = vmatprep.subr.msk.mxu0 %vm693_vm1, %v1279_v63 }
 0x318   : > { %2407 = vmatmul.mubr.msk.f32.vlgmr.msra.gmra.mxu0 %vm693_vm1, %v980_v0 }
 0x319   : > { %2422 = vmatpush3.xpose.msk.msra.mxu0 %vm693_vm1, %v1279_v63  ;;  %2425 = vmatprep.mubr.msk.f32.mxu0 %vm693_vm1, %v1273_v1 }
 0x31a   : > { %2423 = vmatprep.subr.msk.mxu0 %vm693_vm1, %v1277_v2 }
 0x31d   : > { %2424 = vmatpush3.xpose.msk.msra.mxu0 %vm693_vm1, %v1277_v2 }
 0x320   : > { %2426 = vmatmul.mubr.msk.f32.vlgmr.msra.gmra.mxu0 %vm693_vm1, %v1275_v3 }
 0x3d0   : > { %v2784_v4 = vpop.f32.mrf.mxu0 }
 0x3d2   : > { %v2786_v7 = vpop.f32.mrf.mxu0 }
 0x3d8   : > { %v2408_v8 = vpop.f32.mrf.mxu0 }
 0x3d9   : > { %v1069_v9 = vsel %vm687_vm3, -1e+20, %v2408_v8 }
 0x3da   : > { %v1059_v10 = vpop.f32.mrf.mxu0  ;;  %v1073_v11 = vsel %vm783_vm4, %v1069_v9, -inf }
 0x3db   : > { %v1068_v12 = vsel %vm687_vm3, -1e+20, %v1059_v10  ;;  %1074 = vmax.xlane.f32.xlu1 %v1073_v11 }
 0x3dc   : > { %v1070_v13 = vsel %vm783_vm4, %v1068_v12, -inf }
 0x3dd   : > { %1071 = vmax.xlane.f32.xlu0 %v1070_v13 }
 0x3e0   : > { %v2427_v14 = vpop.f32.mrf.mxu0 }
 0x3e1   : > { %v1364_v39 = vsel %vm687_vm3, -1e+20, %v2427_v14 }
 0x3e2   : > { %v1354_v15 = vpop.f32.mrf.mxu0  ;;  %v1368_v40 = vsel %vm783_vm4, %v1364_v39, -inf }
 0x3e3   : > { %v1363_v20 = vsel %vm687_vm3, -1e+20, %v1354_v15 }
 0x3e4   : > { %v1365_v21 = vsel %vm783_vm4, %v1363_v20, -inf }
 0x3ec   : > { %1098 = vrot.lane.b32.xlu1 %v2743_v34, %s2566_s18 }
 0x3f0   : > { %1569 = vrot.lane.b32.xlu1 %v2710_v19, %s2568_s24 }
 0x3f3   : > { %1100 = vrot.lane.b32.xlu0 %v2739_v33, %s2566_s18 }
 0x3f4   : > { %1567 = vrot.lane.b32.xlu1 %v2700_v16, %s2568_s24 }
 0x3f7   : > { %1571 = vrot.lane.b32.xlu0 %v2706_v18, %s2568_s24 }
 0x3fb   : > { %1565 = vrot.lane.b32.xlu0 %v2702_v17, %s2568_s24 }
 0x41a   : > { %1366 = vmax.xlane.f32.xlu0 %v1365_v21 }
 0x464   : > { %v1075_v19 = vpop.xlane.xlu1 %1074 }
 0x465   : > { %v1077_v24 = vsub.f32 %v1069_v9, %v1075_v19 }
 0x466   : > { %v1072_v25 = vpop.xlane.xlu0 %1071 }
 0x467   : > { %v1080_v27 = vmul.f32 1.442695, %v1077_v24  ;;  %v1076_v28 = vsub.f32 %v1068_v12, %v1072_v25 }
 0x468   : > { %v1099_v29 = vpop.permute.xlu1 %1098 }
 0x469   : > { %2525 = vpow2.f32 %v1080_v27  ;;  %v1078_v16 = vmul.f32 1.442695, %v1076_v28 }
 0x46a   : > { %v1101_v18 = vpop.permute.xlu0 %1100 }
 0x46b   : > { %2527 = vpow2.f32 %v1078_v16  ;;  %2409 = vmatprep.subr.mxu1 %v1101_v18 }
 0x46c   : > { %2410 = vmatpush3.msra.mxu1 %v1101_v18  ;;  %v1570_v30 = vpop.permute.xlu1 %1569 }
 0x46d   : > { %2411 = vmatprep.subr.mxu1 %v1099_v29 }
 0x46e   : > { %2412 = vmatpush3.msra.mxu1 %v1099_v29  ;;  %v1572_v17 = vpop.permute.xlu0 %1571 }
 0x46f   : > { %2440 = vmatprep.subr.msk.mxu0 %vm693_vm1, %v1572_v17  ;;  %2416 = vmatprep.subr.mxu1 %v2238_v41 }
 0x470   : > { %2441 = vmatpush3.xpose.msk.msra.mxu0 %vm693_vm1, %v1572_v17  ;;  %v1568_v35 = vpop.permute.xlu1 %1567 }
 0x471   : > { %2442 = vmatprep.subr.msk.mxu0 %vm693_vm1, %v1570_v30 }
 0x472   : > { %v1566_v31 = vpop.permute.xlu0 %1565 }
 0x473   : > { %2444 = vmatprep.mubr.msk.f32.mxu0 %vm693_vm1, %v1566_v31 }
 0x474   : > { %2443 = vmatpush3.xpose.msk.msra.mxu0 %vm693_vm1, %v1570_v30 }
 0x476   : > { %v2526_v32 = vpop.eup %2525 }
 0x477   : > { %2445 = vmatmul.mubr.msk.f32.vlgmr.msra.gmra.mxu0 %vm693_vm1, %v1568_v35  ;;  %v1085_v36 = vsel %vm783_vm4, %v2526_v32, 0.0 }
 0x478   : > { %v2528_v37 = vpop.eup %2527  ;;  %1086 = vadd.xlane.f32.xlu1 %v1085_v36 }
 0x479   : > { %2413 = vmatprep.mubr.msk.f32.mxu1 %vm783_vm4, %v2528_v37  ;;  %v1082_v38 = vsel %vm783_vm4, %v2528_v37, 0.0 }
 0x47a   : > { %1083 = vadd.xlane.f32.xlu0 %v1082_v38  ;;  %2414 = vmatmul.mubr.msk.f32.vlgmr.msra.gmra.mxu1 %vm783_vm4, %v2526_v32 }
 0x47b   : > { %2417 = vmatpush3.msra.mxu1 %v2238_v41 }
 0x47e   : > { %1369 = vmax.xlane.f32.xlu0 %v1368_v40 }
 0x489   : > { %1391 = vrot.lane.b32.xlu1 %v2743_v34, %s2567_s23 }
 0x494   : > { %1393 = vrot.lane.b32.xlu0 %v2739_v33, %s2567_s23 }
 0x4a3   : > { %v1367_v42 = vpop.xlane.xlu0 %1366 }
 0x4a4   : > { %v1371_v43 = vsub.f32 %v1363_v20, %v1367_v42 }
 0x4a6   : > { %v1373_v44 = vmul.f32 1.442695, %v1371_v43 }
 0x4a8   : > { %2529 = vpow2.f32 %v1373_v44 }
 0x4b5   : > { %v2530_v45 = vpop.eup %2529 }
 0x4b6   : > { %v1377_v46 = vsel %vm783_vm4, %v2530_v45, 0.0 }
 0x4b7   : > { %1378 = vadd.xlane.f32.xlu1 %v1377_v46 }
 0x501   : > { %v1087_v54 = vpop.xlane.xlu1 %1086 }
 0x503   : > { %v1084_v47 = vpop.xlane.xlu0 %1083 }
 0x505   : > { %v1392_v13 = vpop.permute.xlu1 %1391 }
 0x507   : > { %v1370_v48 = vpop.xlane.xlu0 %1369 }
 0x508   : > { %v1372_v49 = vsub.f32 %v1364_v39, %v1370_v48 }
 0x50a   : > { %v1375_v50 = vmul.f32 1.442695, %v1372_v49 }
 0x50b   : > { %v1394_v51 = vpop.permute.xlu0 %1393 }
 0x50c   : > { %2531 = vpow2.f32 %v1375_v50  ;;  %2428 = vmatprep.subr.mxu1 %v1394_v51 }
 0x50d   : > { %2533 = vrcp.f32 %v1084_v47 }
 0x50e   : > { %2535 = vrcp.f32 %v1087_v54 }
 0x519   : > { %v2532_v52 = vpop.eup %2531 }
 0x51a   : > { %v1380_v53 = vsel %vm783_vm4, %v2532_v52, 0.0  ;;  %v2534_v55 = vpop.eup %2533 }
 0x51b   : > { %1381 = vadd.xlane.f32.xlu0 %v1380_v53  ;;  %v2536_v56 = vpop.eup %2535  ;;  %v1090_v57 = vmul.f32 %v2534_v55, %v1084_v47 }
 0x51c   : > { %v1091_v58 = vmul.f32 %v2536_v56, %v1087_v54 }
 0x51d   : > { %v1092_v59 = vsub.f32 2.0, %v1090_v57 }
 0x51e   : > { %v1093_v61 = vsub.f32 2.0, %v1091_v58 }
 0x51f   : > { %v1094_v3 = vmul.f32 %v2534_v55, %v1092_v59 }
 0x520   : > { %v1095_v9 = vmul.f32 %v2536_v56, %v1093_v61 }
 0x537   : > { %v2446_v60 = vpop.f32.mrf.mxu0 }
 0x538   : > { %v1657_v62 = vsel %vm687_vm3, -1e+20, %v2446_v60 }
 0x539   : > { %v1647_v63 = vpop.f32.mrf.mxu0  ;;  %v1661_v0 = vsel %vm783_vm4, %v1657_v62, -inf }
 0x53a   : > { %v1656_v1 = vsel %vm687_vm3, -1e+20, %v1647_v63  ;;  %v2415_v2 = vpop.f32.mrf.mxu1  ;;  %1662 = vmax.xlane.f32.xlu1 %v1661_v0 }
 0x53b   : > { %v1658_v8 = vsel %vm783_vm4, %v1656_v1, -inf  ;;  %v1186_v12 = vmul.f32 %v2415_v2, %v1095_v9 }
 0x53c   : > { %v1176_v10 = vpop.f32.mrf.mxu1  ;;  %1659 = vmax.xlane.f32.xlu0 %v1658_v8 }
 0x53d   : > { %v1185_v11 = vmul.f32 %v1176_v10, %v1094_v3 }
 0x53f   : > { %2418 = vmatprep.mubr.msk.f32.mxu1 %vm693_vm1, %v1185_v11 }
 0x540   : > { %2419 = vmatmul.mubr.msk.f32.vlgmr.msra.gmra.mxu1 %vm693_vm1, %v1186_v12  ;;  %v1379_v14 = vpop.xlane.xlu1 %1378 }
 0x541   : > { %2429 = vmatpush3.msra.mxu1 %v1394_v51  ;;  %2432 = vmatprep.mubr.msk.f32.mxu1 %vm783_vm4, %v2530_v45 }
 0x542   : > { %2430 = vmatprep.subr.mxu1 %v1392_v13 }
 0x543   : > { %2431 = vmatpush3.msra.mxu1 %v1392_v13 }
 0x544   : > { %2433 = vmatmul.mubr.msk.f32.vlgmr.msra.gmra.mxu1 %vm783_vm4, %v2532_v52  ;;  %2435 = vmatprep.subr.mxu1 %v2247_v26 }
 0x545   : > { %2436 = vmatpush3.msra.mxu1 %v2247_v26 }
 0x54b   : > { %1684 = vrot.lane.b32.xlu1 %v2743_v34, %s2568_s24 }
 0x552   : > { %1686 = vrot.lane.b32.xlu0 %v2739_v33, %s2568_s24  ;;  %v2853_v33 = vld [vmem:[%s2980_s7] sm:$0x3f] }
 0x553   : > { %v692_v31 = vrot.slane %v2853_v33, %v685_v23 }
 0x555   : > { %v976_v36 = vadd.f32 %v2784_v4, %v692_v31  ;;  %v975_v38 = vadd.f32 %v2786_v7, %v692_v31  ;;  %v2256_v4 = vld [vmem:[%s2979_s6 + $0x18] sm:$0xff]  ;;  %v2005_v31 = vld [vmem:[%s2983_s10 + $0x60] sm:$0xff] }
 0x5a4   : > { %v1382_v15 = vpop.xlane.xlu0 %1381 }
 0x5c3   : > { %v1663_v20 = vpop.xlane.xlu1 %1662 }
 0x5c4   : > { %v1665_v21 = vsub.f32 %v1657_v62, %v1663_v20 }
 0x5c5   : > { %v1660_v19 = vpop.xlane.xlu0 %1659 }
 0x5c6   : > { %v1668_v24 = vmul.f32 1.442695, %v1665_v21  ;;  %v1664_v25 = vsub.f32 %v1656_v1, %v1660_v19 }
 0x5c7   : > { %v1685_v23 = vpop.permute.xlu1 %1684 }
 0x5c8   : > { %2537 = vpow2.f32 %v1668_v24  ;;  %v1666_v27 = vmul.f32 1.442695, %v1664_v25 }
 0x5c9   : > { %v1687_v28 = vpop.permute.xlu0 %1686 }
 0x5ca   : > { %2539 = vpow2.f32 %v1666_v27  ;;  %2447 = vmatprep.subr.mxu1 %v1687_v28 }
 0x5cb   : > { %2541 = vrcp.f32 %v1379_v14 }
 0x5cc   : > { %2543 = vrcp.f32 %v1382_v15 }
 0x5d5   : > { %v2538_v16 = vpop.eup %2537 }
 0x5d6   : > { %v1673_v29 = vsel %vm783_vm4, %v2538_v16, 0.0 }
 0x5d7   : > { %v2540_v18 = vpop.eup %2539  ;;  %1674 = vadd.xlane.f32.xlu0 %v1673_v29  ;;  %v1900_v29 = vld [vmem:[%s2981_s8 + $0x8] sm:$0xff] }
 0x5d8   : > { %v1670_v34 = vsel %vm783_vm4, %v2540_v18, 0.0  ;;  %v2542_v17 = vpop.eup %2541 }
 0x5d9   : > { %1671 = vadd.xlane.f32.xlu1 %v1670_v34  ;;  %v2544_v30 = vpop.eup %2543  ;;  %v1385_v32 = vmul.f32 %v2542_v17, %v1379_v14  ;;  %v2008_v34 = vld [vmem:[%s2983_s10 + $0x78] sm:$0xff] }
 0x5da   : > { %v1386_v35 = vmul.f32 %v2544_v30, %v1382_v15 }
 0x5db   : > { %v1387_v39 = vsub.f32 2.0, %v1385_v32  ;;  %v2004_v32 = vld [vmem:[%s2983_s10 + $0x58] sm:$0xff] }
 0x5dc   : > { %v1388_v41 = vsub.f32 2.0, %v1386_v35  ;;  %v2003_v35 = vld [vmem:[%s2983_s10 + $0x50] sm:$0xff] }
 0x5dd   : > { %v1389_v45 = vmul.f32 %v2542_v17, %v1387_v39  ;;  %v2007_v17 = vld [vmem:[%s2983_s10 + $0x70] sm:$0xff] }
 0x5de   : > { %v1390_v46 = vmul.f32 %v2544_v30, %v1388_v41  ;;  %v2006_v30 = vld [vmem:[%s2983_s10 + $0x68] sm:$0xff]  ;;  %v1999_v39 = vld [vmem:[%s2983_s10 + $0x30] sm:$0xff]  ;;  %v1997_v41 = vld [vmem:[%s2983_s10 + $0x20] sm:$0xff] }
 0x600   : > { %v2420_v37 = vpop.f32.mrf.mxu1 }
 0x601   : > { %v1271_v40 = vadd.f32 %v2420_v37, %v976_v36  ;;  %v2002_v36 = vld [vmem:[%s2983_s10 + $0x48] sm:$0xff]  ;;  %v2001_v37 = vld [vmem:[%s2983_s10 + $0x40] sm:$0xff] }
 0x602   : > { %v1261_v42 = vpop.f32.mrf.mxu1 }
 0x603   : > { %v1270_v43 = vadd.f32 %v1261_v42, %v975_v38  ;;  %v2000_v38 = vld [vmem:[%s2983_s10 + $0x38] sm:$0xff] }
 0x604   : > { %v2434_v44 = vpop.f32.mrf.mxu1 }
 0x605   : > { %v1479_v49 = vmul.f32 %v2434_v44, %v1390_v46 }
 0x606   : > { %v1469_v47 = vpop.f32.mrf.mxu1 }
 0x607   : > { %v1478_v48 = vmul.f32 %v1469_v47, %v1389_v45 }
 0x609   : > { %2437 = vmatprep.mubr.msk.f32.mxu1 %vm693_vm1, %v1478_v48  ;;  %v1889_v48 = vsub.s32 1, %v2725_v22 }
 0x60a   : > { %2438 = vmatmul.mubr.msk.f32.vlgmr.msra.gmra.mxu1 %vm693_vm1, %v1479_v49 }
 0x60b   : > { %2448 = vmatpush3.msra.mxu1 %v1687_v28  ;;  %2451 = vmatprep.mubr.msk.f32.mxu1 %vm783_vm4, %v2540_v18  ;;  %v1902_v28 = vld [vmem:[%s2981_s8 + $0x18] sm:$0xff]  ;;  %v1899_v18 = vld [vmem:[%s2981_s8] sm:$0xff] }
 0x60c   : > { %2449 = vmatprep.subr.mxu1 %v1685_v23  ;;  %2459 = vmatprep.subr.mxu0 %v1902_v28 }
 0x60d   : > { %2450 = vmatpush3.msra.mxu1 %v1685_v23  ;;  %2460 = vmatpush3.msra.mxu0 %v1902_v28  ;;  %v1890_v23 = vrot.slane %v2853_v33, %v1889_v48 }
 0x60e   : > { %2452 = vmatmul.mubr.msk.f32.vlgmr.msra.gmra.mxu1 %vm783_vm4, %v2538_v16  ;;  %2454 = vmatprep.subr.mxu1 %v2256_v4  ;;  %v1901_v16 = vld [vmem:[%s2981_s8 + $0x10] sm:$0xff] }
 0x60f   : > { %2455 = vmatpush3.msra.mxu1 %v2256_v4  ;;  %2461 = vmatprep.subr.mxu0 %v1901_v16  ;;  %v1895_v4 = vsub.s32 2, %v2725_v22 }
 0x610   : > { %2462 = vmatpush3.msra.mxu0 %v1901_v16  ;;  %2470 = vmatprep.subr.mxu1 %v2008_v34 }
 0x611   : > { %2463 = vmatprep.subr.mxu0 %v1900_v29 }
 0x612   : > { %2464 = vmatpush3.msra.mxu0 %v1900_v29 }
 0x613   : > { %2465 = vmatprep.subr.mxu0 %v1899_v18 }
 0x614   : > { %2466 = vmatpush3.msra.mxu0 %v1899_v18 }
 0x660   : > { %v1675_v50 = vpop.xlane.xlu0 %1674 }
 0x662   : > { %v1672_v7 = vpop.xlane.xlu1 %1671 }
 0x663   : > { %2545 = vrcp.f32 %v1672_v7 }
 0x664   : > { %2547 = vrcp.f32 %v1675_v50 }
 0x670   : > { %v2546_v51 = vpop.eup %2545 }
 0x671   : > { %v2548_v52 = vpop.eup %2547  ;;  %v1678_v53 = vmul.f32 %v2546_v51, %v1672_v7 }
 0x672   : > { %v1679_v54 = vmul.f32 %v2548_v52, %v1675_v50 }
 0x673   : > { %v1680_v56 = vsub.f32 2.0, %v1678_v53  ;;  %v1896_v53 = vrot.slane %v2853_v33, %v1895_v4 }
 0x674   : > { %v1681_v58 = vsub.f32 2.0, %v1679_v54 }
 0x675   : > { %v1682_v62 = vmul.f32 %v2546_v51, %v1680_v56 }
 0x676   : > { %v1683_v63 = vmul.f32 %v2548_v52, %v1681_v58  ;;  %v1995_v58 = vld [vmem:[%s2983_s10 + $0x10] sm:$0xff] }
 0x6ca   : > { %v2439_v55 = vpop.f32.mrf.mxu1 }
 0x6cb   : > { %v1564_v57 = vadd.f32 %v2439_v55, %v1271_v40  ;;  %v1998_v40 = vld [vmem:[%s2983_s10 + $0x28] sm:$0xff] }
 0x6cc   : > { %v1554_v59 = vpop.f32.mrf.mxu1 }
 0x6cd   : > { %v1563_v60 = vadd.f32 %v1554_v59, %v1270_v43  ;;  %v1994_v59 = vld [vmem:[%s2983_s10 + $0x8] sm:$0xff] }
 0x6ce   : > { %v2453_v61 = vpop.f32.mrf.mxu1 }
 0x6cf   : > { %v1772_v2 = vmul.f32 %v2453_v61, %v1683_v63  ;;  %v2259_v61 = vld [vmem:[%s2982_s9] ss:$0 sm:$0xff] }
 0x6d0   : > { %v1762_v0 = vpop.f32.mrf.mxu1 }
 0x6d1   : > { %v1771_v1 = vmul.f32 %v1762_v0, %v1682_v62 }
 0x6d3   : > { %2456 = vmatprep.mubr.msk.f32.mxu1 %vm693_vm1, %v1771_v1 }
 0x6d4   : > { %2457 = vmatmul.mubr.msk.f32.vlgmr.msra.gmra.mxu1 %vm693_vm1, %v1772_v2 }
 0x6d5   : > { %2471 = vmatpush3.msra.mxu1 %v2008_v34 }
 0x6d6   : > { %2472 = vmatprep.subr.mxu1 %v2007_v17 }
 0x6d7   : > { %2473 = vmatpush3.msra.mxu1 %v2007_v17 }
 0x6d8   : > { %2474 = vmatprep.subr.mxu1 %v2006_v30 }
 0x6d9   : > { %2475 = vmatpush3.msra.mxu1 %v2006_v30 }
 0x6da   : > { %2476 = vmatprep.subr.mxu1 %v2005_v31 }
 0x6db   : > { %2477 = vmatpush3.msra.mxu1 %v2005_v31 }
 0x6dc   : > { %2478 = vmatprep.subr.mxu1 %v2004_v32 }
 0x6dd   : > { %2479 = vmatpush3.msra.mxu1 %v2004_v32 }
 0x6de   : > { %2480 = vmatprep.subr.mxu1 %v2003_v35 }
 0x6df   : > { %2481 = vmatpush3.msra.mxu1 %v2003_v35  ;;  %v2118_v35 = vsub.s32 4, %v2725_v22 }
 0x6e0   : > { %2482 = vmatprep.subr.mxu1 %v2002_v36 }
 0x6e1   : > { %2483 = vmatpush3.msra.mxu1 %v2002_v36 }
 0x6e2   : > { %2484 = vmatprep.subr.mxu1 %v2001_v37 }
 0x6e3   : > { %2485 = vmatpush3.msra.mxu1 %v2001_v37  ;;  %v2124_v37 = vsub.s32 5, %v2725_v22 }
 0x6e4   : > { %2486 = vmatprep.subr.mxu1 %v2000_v38 }
 0x6e5   : > { %2487 = vmatpush3.msra.mxu1 %v2000_v38  ;;  %v2119_v38 = vrot.slane %v2853_v33, %v2118_v35 }
 0x6e6   : > { %2488 = vmatprep.subr.mxu1 %v1999_v39 }
 0x6e7   : > { %2489 = vmatpush3.msra.mxu1 %v1999_v39 }
 0x6e8   : > { %2490 = vmatprep.subr.mxu1 %v1998_v40 }
 0x6e9   : > { %2491 = vmatpush3.msra.mxu1 %v1998_v40 }
 0x6ea   : > { %2492 = vmatprep.subr.mxu1 %v1997_v41 }
 0x6eb   : > { %2493 = vmatpush3.msra.mxu1 %v1997_v41 }
 0x794   : > { %v2458_v3 = vpop.f32.mrf.mxu1 }
 0x795   : > { %v1857_v8 = vadd.f32 %v2458_v3, %v1564_v57  ;;  %v1996_v57 = vld [vmem:[%s2983_s10 + $0x18] sm:$0xff] }
 0x796   : > { %v1847_v9 = vpop.f32.mrf.mxu1  ;;  %2494 = vmatprep.subr.mxu1 %v1996_v57 }
 0x797   : > { %v1856_v10 = vadd.f32 %v1847_v9, %v1563_v60  ;;  %v1859_v11 = vadd.f32 %v1857_v8, %v2663_v6  ;;  %2495 = vmatpush3.msra.mxu1 %v1996_v57  ;;  %v1993_v60 = vld [vmem:[%s2983_s10] sm:$0xff]  ;;  %v2011_v8 = vsub.s32 3, %v2725_v22 }
 0x798   : > { %2496 = vmatprep.subr.mxu1 %v1995_v58 }
 0x799   : > { %v1863_v12 = vsel %vm434_vm0, %v1859_v11, 0.0  ;;  %v1858_v13 = vadd.f32 %v1856_v10, %v2661_v5  ;;  %2497 = vmatpush3.msra.mxu1 %v1995_v58  ;;  %v2012_v9 = vrot.slane %v2853_v33, %v2011_v8 }
 0x79a   : > { %1864 = vadd.xlane.f32.xlu1 %v1863_v12  ;;  %2498 = vmatprep.subr.mxu1 %v1994_v59 }
 0x79b   : > { %v1860_v26 = vsel %vm434_vm0, %v1858_v13, 0.0  ;;  %2499 = vmatpush3.msra.mxu1 %v1994_v59 }
 0x79c   : > { %1861 = vadd.xlane.f32.xlu0 %v1860_v26  ;;  %2500 = vmatprep.subr.mxu1 %v1993_v60 }
 0x79d   : > { %2501 = vmatpush3.msra.mxu1 %v1993_v60 }
 0x823   : > { %v1865_v14 = vpop.xlane.xlu1 %1864 }
 0x824   : > { %v1868_v15 = vmul.f32 0.03125, %v1865_v14 }
 0x825   : > { %v1862_v20 = vpop.xlane.xlu0 %1861 }
 0x826   : > { %v2873_v21 = vsub.f32 %v1859_v11, %v1868_v15  ;;  %v1867_v19 = vmul.f32 0.03125, %v1862_v20 }
 0x828   : > { %v2875_v24 = vsub.f32 %v1858_v13, %v1867_v19  ;;  %v1872_v25 = vmul.f32 %v2873_v21, %v2873_v21 }
 0x82a   : > { %v1876_v6 = vsel %vm434_vm0, %v1872_v25, 0.0  ;;  %v1871_v5 = vmul.f32 %v2875_v24, %v2875_v24 }
 0x82b   : > { %1877 = vadd.xlane.f32.xlu1 %v1876_v6 }
 0x82c   : > { %v1873_v27 = vsel %vm434_vm0, %v1871_v5, 0.0 }
 0x82d   : > { %1874 = vadd.xlane.f32.xlu0 %v1873_v27 }
 0x8b4   : > { %v1878_v42 = vpop.xlane.xlu1 %1877 }
 0x8b5   : > { %v1880_v43 = vmul.f32 0.03125, %v1878_v42  ;;  %v2125_v42 = vrot.slane %v2853_v33, %v2124_v37 }
 0x8b6   : > { %v1875_v44 = vpop.xlane.xlu0 %1874 }
 0x8b7   : > { %v1882_v45 = vadd.f32 1e-05, %v1880_v43  ;;  %v1879_v46 = vmul.f32 0.03125, %v1875_v44 }
 0x8b9   : > { %2549 = vrsqrt.f32 %v1882_v45  ;;  %v1881_v47 = vadd.f32 1e-05, %v1879_v46 }
 0x8bb   : > { %2551 = vrsqrt.f32 %v1881_v47 }
 0x8c6   : > { %v2550_v49 = vpop.eup %2549 }
 0x8c7   : > { %v1886_v7 = vmul.f32 %v2550_v49, %v2873_v21 }
 0x8c8   : > { %v2552_v50 = vpop.eup %2551 }
 0x8c9   : > { %v1885_v51 = vmul.f32 %v2552_v50, %v2875_v24  ;;  %v1892_v52 = vmul.f32 %v1890_v23, %v1886_v7 }
 0x8cb   : > { %v1891_v54 = vmul.f32 %v1890_v23, %v1885_v51  ;;  %v1898_v56 = vadd.f32 %v1896_v53, %v1892_v52 }
 0x8cd   : > { %v1897_v55 = vadd.f32 %v1896_v53, %v1891_v54 }
 0x8cf   : > { %2467 = vmatprep.mubr.msk.f32.mxu0 %vm434_vm0, %v1897_v55 }
 0x8d0   : > { %2468 = vmatmul.mubr.msk.f32.vlgmr.msra.gmra.mxu0 %vm434_vm0, %v1898_v56 }
 0x990   : > { %v2469_v62 = vpop.f32.mrf.mxu0 }
 0x991   : > { %v1988_v63 = vadd.f32 %v2469_v62, %v2259_v61 }
 0x992   : > { %v1982_v0 = vpop.f32.mrf.mxu0 }
 0x993   : > { %v1983_v1 = vadd.f32 %v2259_v61, %v1982_v0  ;;  %v1992_v3 = vmax.f32 %v1988_v63, 0.0 }
 0x995   : > { %v1991_v2 = vmax.f32 %v1983_v1, 0.0 }
 0x997   : > { %2502 = vmatprep.mubr.f32.mxu1 %v1991_v2 }
 0x998   : > { %2503 = vmatmul.mubr.f32.vlgmr.msra.gmra.mxu1 %v1992_v3 }
 0xa58   : > { %v2504_v10 = vpop.f32.mrf.mxu1 }
 0xa59   : > { %v2085_v11 = vadd.f32 %v2504_v10, %v2012_v9 }
 0xa5a   : > { %v2079_v12 = vpop.f32.mrf.mxu1 }
 0xa5b   : > { %v2080_v13 = vadd.f32 %v2079_v12, %v2012_v9  ;;  %v2089_v26 = vadd.f32 %v2085_v11, %v1898_v56 }
 0xa5d   : > { %v2093_v14 = vsel %vm434_vm0, %v2089_v26, 0.0  ;;  %v2088_v15 = vadd.f32 %v2080_v13, %v1897_v55 }
 0xa5e   : > { %2094 = vadd.xlane.f32.xlu1 %v2093_v14 }
 0xa5f   : > { %v2090_v20 = vsel %vm434_vm0, %v2088_v15, 0.0 }
 0xa60   : > { %2091 = vadd.xlane.f32.xlu0 %v2090_v20 }
 0xae7   : > { %v2095_v21 = vpop.xlane.xlu1 %2094 }
 0xae8   : > { %v2097_v19 = vmul.f32 0.03125, %v2095_v21 }
 0xae9   : > { %v2092_v24 = vpop.xlane.xlu0 %2091 }
 0xaea   : > { %v2099_v25 = vsub.f32 %v2089_v26, %v2097_v19  ;;  %v2096_v6 = vmul.f32 0.03125, %v2092_v24 }
 0xaec   : > { %v2098_v5 = vsub.f32 %v2088_v15, %v2096_v6  ;;  %v2101_v27 = vmul.f32 %v2099_v25, %v2099_v25 }
 0xaee   : > { %v2105_v28 = vsel %vm434_vm0, %v2101_v27, 0.0  ;;  %v2100_v16 = vmul.f32 %v2098_v5, %v2098_v5 }
 0xaef   : > { %2106 = vadd.xlane.f32.xlu1 %v2105_v28 }
 0xaf0   : > { %v2102_v29 = vsel %vm434_vm0, %v2100_v16, 0.0 }
 0xaf1   : > { %2103 = vadd.xlane.f32.xlu0 %v2102_v29 }
 0xb78   : > { %v2107_v18 = vpop.xlane.xlu1 %2106 }
 0xb79   : > { %v2109_v34 = vmul.f32 0.03125, %v2107_v18 }
 0xb7a   : > { %v2104_v17 = vpop.xlane.xlu0 %2103 }
 0xb7b   : > { %v2111_v30 = vadd.f32 1e-05, %v2109_v34  ;;  %v2108_v31 = vmul.f32 0.03125, %v2104_v17 }
 0xb7d   : > { %2553 = vrsqrt.f32 %v2111_v30  ;;  %v2110_v32 = vadd.f32 1e-05, %v2108_v31 }
 0xb7f   : > { %2555 = vrsqrt.f32 %v2110_v32 }
 0xb8a   : > { %v2554_v36 = vpop.eup %2553 }
 0xb8b   : > { %v2115_v39 = vmul.f32 %v2554_v36, %v2099_v25 }
 0xb8c   : > { %v2556_v40 = vpop.eup %2555 }
 0xb8d   : > { %v2114_v41 = vmul.f32 %v2556_v40, %v2098_v5  ;;  %v2121_v43 = vmul.f32 %v2119_v38, %v2115_v39 }
 0xb8f   : > { %v2120_v44 = vmul.f32 %v2119_v38, %v2114_v41  ;;  %v2127_v46 = vadd.f32 %v2125_v42, %v2121_v43 }
 0xb91   : > { %v2126_v45 = vadd.f32 %v2125_v42, %v2120_v44  ;;  %2129 = vst.msk [vmem:[%s424_s26 + $0x8] sm:$0xff] %vm434_vm0, %v2127_v46 }
 0xb93   : > { %2128 = vst.msk [vmem:[%s424_s26] sm:$0xff] %vm434_vm0, %v2126_v45 }
 0xb94 PF: > { %s21_s17 = sadd.s32 1, %s2563_s17  }
 0xb95   : > { %p18_p5 = scmp.ge.s32.totalorder %s21_s17, 4  }
 0xb97   :  { %20 = sbr.rel (!%p18_p5) target bundleno = 1 (0x1), region = 103 }

// kernel: encoder_forward.3
= control target key start
LH: loop header
LB: loop body
LE: loop exit
PB: predicated region body
PF: predicated region fallthrough
CT: control target
= control target key end

     0   :  { %s3162_s0 = inlined_call_operand.vmem [shape: f32[32,32], index: 0, kind: input, shape index: {}]   ;;  %s3163_s1 = inlined_call_operand.vmem [shape: f32[32,32], index: 1, kind: input, shape index: {}]   ;;  %s3164_s2 = inlined_call_operand.vmem [shape: f32[2,1,16], index: 2, kind: input, shape index: {}]   ;;  %s3165_s3 = inlined_call_operand.vmem [shape: f32[32,32], index: 3, kind: input, shape index: {}]   ;;  %s3166_s4 = inlined_call_operand.vmem [shape: f32[32,32], index: 4, kind: input, shape index: {}]   ;;  %s3167_s5 = inlined_call_operand.vmem [shape: f32[32,32], index: 5, kind: input, shape index: {}]   ;;  %s3168_s6 = inlined_call_operand.vmem [shape: f32[4,8,32], index: 6, kind: input, shape index: {}]   ;;  %s3169_s7 = inlined_call_operand.vmem [shape: f32[6,32], index: 7, kind: input, shape index: {}]   ;;  %s3170_s8 = inlined_call_operand.vmem [shape: f32[32,128], index: 8, kind: input, shape index: {}]   ;;  %s3171_s9 = inlined_call_operand.vmem [shape: f32[1,128], index: 9, kind: input, shape index: {}]   ;;  %s3172_s10 = inlined_call_operand.vmem [shape: f32[128,32], index: 10, kind: input, shape index: {}]   ;;  %s3173_s11 = inlined_call_operand.hbm [shape: f32[32,32], index: 11, kind: output, shape index: {}]  }
   0x1   :  { %3174 = sst [smem:[#allocation5_spill]] %s3162_s0 }
   0x2   :  { %16 = vsyncpa [#allocation3], 0 }
   0x3   :  { %18 = vsyncpa [#allocation3 + $0x1], 0  ;;  %s2739_s17 = smov 0   ;;  %s2741_s18 = smov 0  }
   0x4   :  { %s2743_s19 = smov 0   ;;  %s2745_s20 = smov 0  }
   0x5 LB: > { %s2760_s21 = sadd.s32 4294967295, %s2670_s20   ;;  %s2225_s22 = sadd.s32 4294967294, %s2670_s20   ;;  %s2670_s20 = sphi %s2745_s20, %s3181_s20   ;;  %s2666_s19 = sphi %s2743_s19, %s3180_s19   ;;  %s2662_s18 = sphi %s2741_s18, %s3179_s18   ;;  %s2658_s17 = sphi %s2739_s17, %s3178_s17  }
   0x6   : > { %s2764_s23 = sadd.s32 1, %s2670_s20   ;;  %s277_s24 = sadd.s32 1, %s2666_s19 }
   0x7   : > { %s274_s25 = ssub.s32 %s2670_s20, %s2764_s23  ;;  %p287_p0 = scmp.ne.s32.totalorder %s2666_s19, %s2662_s18 }
   0x8   : > { %p275_p1 = scmp.eq.s32.totalorder %s274_s25, 0  ;;  %p288_p2 = scmp.eq.s32.totalorder %s2760_s21, 1 }
   0x9   : > { %p293_p3 = scmp.ne.s32.totalorder %s2662_s18, %s2658_s17  ;;  %p294_p4 = scmp.eq.s32.totalorder %s2225_s22, 1 }
   0xa   : > { %s2775_s26 = scalar_select %p275_p1, %s2666_s19, %s277_s24  }
   0xb   : > { %p2777_p5 = por %p288_p2, %p287_p0  ;;  %p2781_p6 = por %p294_p4, %p293_p3 }
   0xc   : > { %p2228_p7 = scmp.ge.s32.totalorder %s2670_s20, 1  ;;  %p360_p8 = scmp.lt.s32.totalorder %s2670_s20, 3 }
   0xe   : > { %p361_p9 = pnand %p2228_p7, %p360_p8 }
   0xf   : > { %s2230_s14 = sshll.u32 (!%p361_p9), %s2760_s21, 1  ;;  %s3177_s0 = sld [smem:[#allocation5_spill]] (!%p361_p9) }
  0x10   : > { %364 = sbr.rel (%p361_p9) target bundleno = 2987 (0xbab), region = 64  ;;  %p409_p10 = scmp.lt.s32.totalorder (!%p361_p9), %s2230_s14, 3 }
  0x11   : > { %p420_p11 = scmp.lt.s32.totalorder (!%p361_p9), %s2760_s21, 1  ;;  %s2673_s22 = smov (!%p361_p9), 120  }
  0x12   : > { %s2674_s30 = smov (!%p361_p9), 112   ;;  %s405_s13 = sand.u32 (!%p361_p9), 1, %s2662_s18  }
  0x13   : > { %s2283_s15 = sshll.u32 (!%p361_p9), %s2760_s21, 8 }
  0x14   : > { %s3116_s29 = scalar_lea.hbm (!%p361_p9), %s3173_s11, %s2283_s15 }
  0x15   : > { %v431_v0 = vld [vmem:[%s3165_s3 + $0x18] sm:$0xff]  ;;  %v430_v1 = vld [vmem:[%s3165_s3 + $0x10] sm:$0xff]  ;;  %v429_v2 = vld [vmem:[%s3165_s3 + $0x8] sm:$0xff]  ;;  %s3183_s14 = smov (!%p409_p10, %s2230_s14), 3  ;;  %vm432_vm0 = vcmask 261120   ;;  %vm691_vm1 = vcmask 64512   ;;  %v681_v20 = vlaneseq }
  0x16   : > { %2370 = vmatprep.subr.mxu0 %v431_v0  ;;  %v428_v3 = vld [vmem:[%s3165_s3] sm:$0xff]  ;;  %s2231_s25 = sshll.u32 %s3183_s14, 3  ;;  %v517_v4 = vld [vmem:[%s3166_s4 + $0x18] sm:$0xff]  ;;  %v516_v7 = vld [vmem:[%s3166_s4 + $0x10] sm:$0xff]  ;;  %v2672_v24 = vmov 0   ;;  %vm781_vm4 = vcmask 130048  }
  0x17   : > { %2371 = vmatpush3.msra.mxu0 %v431_v0  ;;  %s418_s12 = scalar_lea.vmem %s3163_s1, %s2231_s25  ;;  %v515_v8 = vld [vmem:[%s3166_s4 + $0x8] sm:$0xff]  ;;  %v514_v9 = vld [vmem:[%s3166_s4] sm:$0xff]  ;;  %v596_v10 = vld [vmem:[%s3167_s5 + $0x18] sm:$0xff]  ;;  %s412_s24 = scalar_lea.vmem %s3177_s0, %s2231_s25  ;;  %v2872_v22 = vshrl.u32 %v681_v20, 7 }
  0x18   : > { %2372 = vmatprep.subr.mxu0 %v430_v1  ;;  %v2809_v5 = vld [vmem:[%s418_s12] sm:$0xff]  ;;  %v2811_v6 = vld [vmem:[%s418_s12 + $0x8] sm:$0xff]  ;;  %v595_v11 = vld [vmem:[%s3167_s5 + $0x10] sm:$0xff]  ;;  %s421_s25 = scalar_select %p420_p11, %s2760_s21, 1 }
  0x19   : > { %2373 = vmatpush3.msra.mxu0 %v430_v1  ;;  %2378 = vmatprep.mubr.msk.f32.mxu0 %vm432_vm0, %v2809_v5  ;;  %v426_v12 = vld [vmem:[%s412_s24] sm:$0xff]  ;;  %v594_v13 = vld [vmem:[%s3167_s5 + $0x8] sm:$0xff]  ;;  %v683_v23 = vsub.s32 0, %v2872_v22  ;;  %s2675_s12 = smov 104   ;;  %s3122_s21 = scalar_lea.sflag [#allocation3], %s405_s13 }
  0x1a   : > { %2374 = vmatprep.subr.mxu0 %v429_v2  ;;  %v593_v14 = vld [vmem:[%s3167_s5] sm:$0xff]  ;;  %v427_v15 = vld [vmem:[%s412_s24 + $0x8] sm:$0xff]  ;;  %s422_s16 = scalar_lea.vmem %s3164_s2, %s421_s25  ;;  %s2229_s25 = sshll.u32 %s405_s13, 4 }
  0x1b   : > { %2375 = vmatpush3.msra.mxu0 %v429_v2  ;;  %v678_v21 = vld [vmem:[%s422_s16] sm:$0x1]  ;;  %s407_s14 = scalar_lea.vmem [#allocation2], %s2229_s25 }
  0x1c   : > { %2376 = vmatprep.subr.mxu0 %v428_v3  ;;  %vm679_vm2 = vcmp.eq.f32.partialorder %v678_v21, 0.0  ;;  %v891_v35 = vld [vmem:[%s3168_s6] sm:$0xff]  ;;  %s2142_s16 = sshll.u32 %s407_s14, 4  ;;  %s3118_s16 = int_to_ptr.vmem [resolvable:$true] %s2142_s16 }
  0x1d   : > { %2377 = vmatpush3.msra.mxu0 %v428_v3  ;;  %v680_v25 = vsel %vm679_vm2, 1, %v2672_v24 }
  0x1e   : > { %2379 = vmatmul.mubr.msk.f32.vlgmr.msra.gmra.mxu0 %vm432_vm0, %v2811_v6  ;;  %2381 = vmatprep.subr.mxu0 %v517_v4  ;;  %v2877_v26 = vrot.slane %v680_v25, %v683_v23 }
  0x1f   : > { %2382 = vmatpush3.msra.mxu0 %v517_v4  ;;  %2389 = vmatprep.mubr.msk.f32.mxu0 %vm432_vm0, %v2809_v5 }
  0x20   : > { %2383 = vmatprep.subr.mxu0 %v516_v7  ;;  %vm685_vm3 = vcmp.eq.s32.totalorder %v2877_v26, 1  ;;  %v2263_v26 = vld [vmem:[%s3168_s6 + $0x10] sm:$0xff] }
  0x21   : > { %2384 = vmatpush3.msra.mxu0 %v516_v7 }
  0x22   : > { %2385 = vmatprep.subr.mxu0 %v515_v8 }
  0x23   : > { %2386 = vmatpush3.msra.mxu0 %v515_v8 }
  0x24   : > { %2387 = vmatprep.subr.mxu0 %v514_v9 }
  0x25   : > { %2388 = vmatpush3.msra.mxu0 %v514_v9 }
  0x26   : > { %2390 = vmatmul.mubr.msk.f32.vlgmr.msra.gmra.mxu0 %vm432_vm0, %v2811_v6  ;;  %2392 = vmatprep.subr.mxu0 %v596_v10 }
  0x27   : > { %2393 = vmatpush3.msra.mxu0 %v596_v10  ;;  %2400 = vmatprep.mubr.msk.f32.mxu0 %vm432_vm0, %v426_v12 }
  0x28   : > { %2394 = vmatprep.subr.mxu0 %v595_v11 }
  0x29   : > { %2395 = vmatpush3.msra.mxu0 %v595_v11 }
  0x2a   : > { %2396 = vmatprep.subr.mxu0 %v594_v13 }
  0x2b   : > { %2397 = vmatpush3.msra.mxu0 %v594_v13 }
  0x2c   : > { %2398 = vmatprep.subr.mxu0 %v593_v14 }
  0x2d   : > { %2399 = vmatpush3.msra.mxu0 %v593_v14 }
  0x2e   : > { %2401 = vmatmul.mubr.msk.f32.vlgmr.msra.gmra.mxu0 %vm432_vm0, %v427_v15 }
  0xde   : > { %v2847_v16 = vpop.f32.mrf.mxu0 }
  0xe0   : > { %v2849_v17 = vpop.f32.mrf.mxu0 }
  0xe1   : > { %2407 = vmatprep.mubr.msk.f32.mxu1 %vm691_vm1, %v2849_v17 }
  0xe6   : > { %v2853_v18 = vpop.f32.mrf.mxu0 }
  0xe7   : > { %2403 = vmatprep.subr.msk.mxu1 %vm691_vm1, %v2853_v18 }
  0xe8   : > { %v2857_v19 = vpop.f32.mrf.mxu0  ;;  %2404 = vmatpush3.xpose.msk.msra.mxu1 %vm691_vm1, %v2853_v18 }
  0xe9   : > { %2405 = vmatprep.subr.msk.mxu1 %vm691_vm1, %v2857_v19 }
  0xec   : > { %2406 = vmatpush3.xpose.msk.msra.mxu1 %vm691_vm1, %v2857_v19 }
  0xee   : > { %v2886_v33 = vpop.f32.mrf.mxu0 }
  0xef   : > { %2408 = vmatmul.mubr.msk.f32.vlgmr.msra.gmra.mxu1 %vm691_vm1, %v2847_v16  ;;  %2410 = vmatprep.subr.mxu0 %v2886_v33 }
  0xf0   : > { %2411 = vmatpush3.msra.mxu0 %v2886_v33  ;;  %v2890_v34 = vpop.f32.mrf.mxu0 }
  0xf1   : > { %2412 = vmatprep.subr.mxu0 %v2890_v34 }
  0xf2   : > { %2413 = vmatpush3.msra.mxu0 %v2890_v34 }
  0xf3   : > { %2417 = vmatprep.subr.mxu0 %v891_v35 }
 0x1af   : > { %v2409_v27 = vpop.f32.mrf.mxu1 }
 0x1b0   : > { %v780_v31 = vsel %vm685_vm3, -1e+20, %v2409_v27 }
 0x1b1   : > { %v770_v28 = vpop.f32.mrf.mxu1  ;;  %v785_v32 = vsel %vm781_vm4, %v780_v31, -inf }
 0x1b2   : > { %v779_v29 = vsel %vm685_vm3, -1e+20, %v770_v28 }
 0x1b3   : > { %v782_v30 = vsel %vm781_vm4, %v779_v29, -inf }
 0x1b4   : > { %783 = vmax.xlane.f32.xlu0 %v782_v30 }
 0x1b8   : > { %786 = vmax.xlane.f32.xlu0 %v785_v32 }
 0x1ce   : > { %981 = vrot.lane.b32.xlu0 %v2853_v18, %s2673_s22 }
 0x1d2   : > { %1276 = vrot.lane.b32.xlu0 %v2853_v18, %s2674_s30 }
 0x1d6   : > { %1270 = vrot.lane.b32.xlu0 %v2849_v17, %s2674_s30 }
 0x23d   : > { %v784_v36 = vpop.xlane.xlu0 %783 }
 0x23e   : > { %v788_v37 = vsub.f32 %v779_v29, %v784_v36 }
 0x240   : > { %v790_v38 = vmul.f32 1.442695, %v788_v37 }
 0x241   : > { %v787_v39 = vpop.xlane.xlu0 %786 }
 0x242   : > { %2570 = vpow2.f32 %v790_v38  ;;  %v789_v40 = vsub.f32 %v780_v31, %v787_v39 }
 0x244   : > { %v792_v41 = vmul.f32 1.442695, %v789_v40 }
 0x245   : > { %v982_v45 = vpop.permute.xlu0 %981 }
 0x246   : > { %2572 = vpow2.f32 %v792_v41  ;;  %v2254_v41 = vld [vmem:[%s3168_s6 + $0x8] sm:$0xff] }
 0x249   : > { %v1277_v63 = vpop.permute.xlu0 %1276 }
 0x24d   : > { %v1271_v1 = vpop.permute.xlu0 %1270 }
 0x24f   : > { %v2571_v42 = vpop.eup %2570 }
 0x250   : > { %2414 = vmatprep.mubr.msk.f32.mxu0 %vm781_vm4, %v2571_v42  ;;  %v794_v46 = vsel %vm781_vm4, %v2571_v42, 0.0 }
 0x253   : > { %v2573_v43 = vpop.eup %2572 }
 0x254   : > { %2415 = vmatmul.mubr.msk.f32.vlgmr.msra.gmra.mxu0 %vm781_vm4, %v2573_v43  ;;  %v797_v44 = vsel %vm781_vm4, %v2573_v43, 0.0 }
 0x255   : > { %2418 = vmatpush3.msra.mxu0 %v891_v35  ;;  %798 = vadd.xlane.f32.xlu1 %v797_v44 }
 0x256   : > { %2422 = vmatprep.subr.msk.mxu0 %vm691_vm1, %v982_v45 }
 0x259   : > { %795 = vadd.xlane.f32.xlu1 %v794_v46 }
 0x26a   : > { %979 = vrot.lane.b32.xlu1 %v2857_v19, %s2673_s22 }
 0x26e   : > { %975 = vrot.lane.b32.xlu1 %v2849_v17, %s2673_s22 }
 0x272   : > { %977 = vrot.lane.b32.xlu1 %v2847_v16, %s2673_s22 }
 0x276   : > { %1274 = vrot.lane.b32.xlu1 %v2857_v19, %s2674_s30 }
 0x27a   : > { %1272 = vrot.lane.b32.xlu1 %v2847_v16, %s2674_s30 }
 0x2de   : > { %v799_v47 = vpop.xlane.xlu1 %798 }
 0x2e2   : > { %v796_v48 = vpop.xlane.xlu1 %795 }
 0x2e3   : > { %2574 = vrcp.f32 %v796_v48 }
 0x2e4   : > { %2576 = vrcp.f32 %v799_v47 }
 0x2e6   : > { %v980_v54 = vpop.permute.xlu1 %979 }
 0x2ea   : > { %v976_v60 = vpop.permute.xlu1 %975 }
 0x2ee   : > { %v978_v0 = vpop.permute.xlu1 %977 }
 0x2f0   : > { %v2575_v49 = vpop.eup %2574 }
 0x2f1   : > { %v2577_v50 = vpop.eup %2576  ;;  %v802_v51 = vmul.f32 %v2575_v49, %v796_v48 }
 0x2f2   : > { %v803_v52 = vmul.f32 %v2577_v50, %v799_v47  ;;  %v1275_v2 = vpop.permute.xlu1 %1274 }
 0x2f3   : > { %v804_v53 = vsub.f32 2.0, %v802_v51 }
 0x2f4   : > { %v805_v55 = vsub.f32 2.0, %v803_v52 }
 0x2f5   : > { %v806_v57 = vmul.f32 %v2575_v49, %v804_v53 }
 0x2f6   : > { %v807_v58 = vmul.f32 %v2577_v50, %v805_v55  ;;  %v1273_v3 = vpop.permute.xlu1 %1272 }
 0x314   : > { %v2416_v56 = vpop.f32.mrf.mxu0 }
 0x315   : > { %v890_v62 = vmul.f32 %v2416_v56, %v807_v58 }
 0x316   : > { %v880_v59 = vpop.f32.mrf.mxu0 }
 0x317   : > { %v889_v61 = vmul.f32 %v880_v59, %v806_v57 }
 0x319   : > { %2419 = vmatprep.mubr.msk.f32.mxu0 %vm691_vm1, %v889_v61 }
 0x31a   : > { %2420 = vmatmul.mubr.msk.f32.vlgmr.msra.gmra.mxu0 %vm691_vm1, %v890_v62 }
 0x31b   : > { %2423 = vmatpush3.xpose.msk.msra.mxu0 %vm691_vm1, %v982_v45  ;;  %2426 = vmatprep.mubr.msk.f32.mxu0 %vm691_vm1, %v976_v60 }
 0x31c   : > { %2424 = vmatprep.subr.msk.mxu0 %vm691_vm1, %v980_v54 }
 0x31f   : > { %2425 = vmatpush3.xpose.msk.msra.mxu0 %vm691_vm1, %v980_v54 }
 0x320   : > { %2441 = vmatprep.subr.msk.mxu0 %vm691_vm1, %v1277_v63 }
 0x322   : > { %2427 = vmatmul.mubr.msk.f32.vlgmr.msra.gmra.mxu0 %vm691_vm1, %v978_v0 }
 0x323   : > { %2442 = vmatpush3.xpose.msk.msra.mxu0 %vm691_vm1, %v1277_v63  ;;  %2445 = vmatprep.mubr.msk.f32.mxu0 %vm691_vm1, %v1271_v1 }
 0x324   : > { %2443 = vmatprep.subr.msk.mxu0 %vm691_vm1, %v1275_v2 }
 0x327   : > { %2444 = vmatpush3.xpose.msk.msra.mxu0 %vm691_vm1, %v1275_v2 }
 0x32a   : > { %2446 = vmatmul.mubr.msk.f32.vlgmr.msra.gmra.mxu0 %vm691_vm1, %v1273_v3 }
 0x3da   : > { %v2931_v4 = vpop.f32.mrf.mxu0 }
 0x3dc   : > { %v2933_v7 = vpop.f32.mrf.mxu0 }
 0x3e2   : > { %v2428_v8 = vpop.f32.mrf.mxu0 }
 0x3e3   : > { %v1067_v9 = vsel %vm685_vm3, -1e+20, %v2428_v8 }
 0x3e4   : > { %v1057_v10 = vpop.f32.mrf.mxu0  ;;  %v1071_v11 = vsel %vm781_vm4, %v1067_v9, -inf }
 0x3e5   : > { %v1066_v12 = vsel %vm685_vm3, -1e+20, %v1057_v10  ;;  %1072 = vmax.xlane.f32.xlu1 %v1071_v11 }
 0x3e6   : > { %v1068_v13 = vsel %vm781_vm4, %v1066_v12, -inf }
 0x3e7   : > { %1069 = vmax.xlane.f32.xlu0 %v1068_v13 }
 0x3ea   : > { %v2447_v14 = vpop.f32.mrf.mxu0 }
 0x3eb   : > { %v1362_v39 = vsel %vm685_vm3, -1e+20, %v2447_v14 }
 0x3ec   : > { %v1352_v15 = vpop.f32.mrf.mxu0  ;;  %v1366_v40 = vsel %vm781_vm4, %v1362_v39, -inf }
 0x3ed   : > { %v1361_v20 = vsel %vm685_vm3, -1e+20, %v1352_v15 }
 0x3ee   : > { %v1363_v21 = vsel %vm781_vm4, %v1361_v20, -inf }
 0x3f6   : > { %1096 = vrot.lane.b32.xlu1 %v2890_v34, %s2673_s22 }
 0x3fa   : > { %1567 = vrot.lane.b32.xlu1 %v2857_v19, %s2675_s12 }
 0x3fd   : > { %1098 = vrot.lane.b32.xlu0 %v2886_v33, %s2673_s22 }
 0x3fe   : > { %1565 = vrot.lane.b32.xlu1 %v2847_v16, %s2675_s12 }
 0x401   : > { %1569 = vrot.lane.b32.xlu0 %v2853_v18, %s2675_s12 }
 0x405   : > { %1563 = vrot.lane.b32.xlu0 %v2849_v17, %s2675_s12 }
 0x424   : > { %1364 = vmax.xlane.f32.xlu0 %v1363_v21 }
 0x46e   : > { %v1073_v19 = vpop.xlane.xlu1 %1072 }
 0x46f   : > { %v1075_v24 = vsub.f32 %v1067_v9, %v1073_v19 }
 0x470   : > { %v1070_v25 = vpop.xlane.xlu0 %1069 }
 0x471   : > { %v1078_v27 = vmul.f32 1.442695, %v1075_v24  ;;  %v1074_v28 = vsub.f32 %v1066_v12, %v1070_v25 }
 0x472   : > { %v1097_v29 = vpop.permute.xlu1 %1096 }
 0x473   : > { %2578 = vpow2.f32 %v1078_v27  ;;  %v1076_v16 = vmul.f32 1.442695, %v1074_v28 }
 0x474   : > { %v1099_v18 = vpop.permute.xlu0 %1098 }
 0x475   : > { %2580 = vpow2.f32 %v1076_v16  ;;  %2429 = vmatprep.subr.mxu1 %v1099_v18 }
 0x476   : > { %2430 = vmatpush3.msra.mxu1 %v1099_v18  ;;  %v1568_v30 = vpop.permute.xlu1 %1567 }
 0x477   : > { %2431 = vmatprep.subr.mxu1 %v1097_v29 }
 0x478   : > { %2432 = vmatpush3.msra.mxu1 %v1097_v29  ;;  %v1570_v17 = vpop.permute.xlu0 %1569 }
 0x479   : > { %2460 = vmatprep.subr.msk.mxu0 %vm691_vm1, %v1570_v17  ;;  %2436 = vmatprep.subr.mxu1 %v2254_v41 }
 0x47a   : > { %2461 = vmatpush3.xpose.msk.msra.mxu0 %vm691_vm1, %v1570_v17  ;;  %v1566_v35 = vpop.permute.xlu1 %1565 }
 0x47b   : > { %2462 = vmatprep.subr.msk.mxu0 %vm691_vm1, %v1568_v30 }
 0x47c   : > { %v1564_v31 = vpop.permute.xlu0 %1563 }
 0x47d   : > { %2464 = vmatprep.mubr.msk.f32.mxu0 %vm691_vm1, %v1564_v31 }
 0x47e   : > { %2463 = vmatpush3.xpose.msk.msra.mxu0 %vm691_vm1, %v1568_v30 }
 0x480   : > { %v2579_v32 = vpop.eup %2578 }
 0x481   : > { %2465 = vmatmul.mubr.msk.f32.vlgmr.msra.gmra.mxu0 %vm691_vm1, %v1566_v35  ;;  %v1083_v36 = vsel %vm781_vm4, %v2579_v32, 0.0 }
 0x482   : > { %v2581_v37 = vpop.eup %2580  ;;  %1084 = vadd.xlane.f32.xlu1 %v1083_v36 }
 0x483   : > { %2433 = vmatprep.mubr.msk.f32.mxu1 %vm781_vm4, %v2581_v37  ;;  %v1080_v38 = vsel %vm781_vm4, %v2581_v37, 0.0 }
 0x484   : > { %1081 = vadd.xlane.f32.xlu0 %v1080_v38  ;;  %2434 = vmatmul.mubr.msk.f32.vlgmr.msra.gmra.mxu1 %vm781_vm4, %v2579_v32 }
 0x485   : > { %2437 = vmatpush3.msra.mxu1 %v2254_v41 }
 0x488   : > { %1367 = vmax.xlane.f32.xlu0 %v1366_v40 }
 0x493   : > { %1389 = vrot.lane.b32.xlu1 %v2890_v34, %s2674_s30 }
 0x49e   : > { %1391 = vrot.lane.b32.xlu0 %v2886_v33, %s2674_s30  ;;  %s2610_s30 = scalar_lea.vmem %s3118_s16, 256 }
 0x49f   : > { %p2611_p12 = scmp.ne.s32.totalorder %s3118_s16, %s2610_s30 }
 0x4a1   : > { %p2612_p13 = pnand %p2611_p12, %p2777_p5 }
 0x4a3   : > { %p2613_p0 = pneg %p2612_p13 }
 0x4ad   : > { %v1365_v42 = vpop.xlane.xlu0 %1364 }
 0x4ae   : > { %v1369_v43 = vsub.f32 %v1361_v20, %v1365_v42 }
 0x4b0   : > { %v1371_v44 = vmul.f32 1.442695, %v1369_v43 }
 0x4b2   : > { %2582 = vpow2.f32 %v1371_v44 }
 0x4bf   : > { %v2583_v45 = vpop.eup %2582 }
 0x4c0   : > { %v1375_v46 = vsel %vm781_vm4, %v2583_v45, 0.0 }
 0x4c1   : > { %1376 = vadd.xlane.f32.xlu1 %v1375_v46 }
 0x50b   : > { %v1085_v54 = vpop.xlane.xlu1 %1084 }
 0x50d   : > { %v1082_v47 = vpop.xlane.xlu0 %1081 }
 0x50f   : > { %v1390_v13 = vpop.permute.xlu1 %1389 }
 0x511   : > { %v1368_v48 = vpop.xlane.xlu0 %1367 }
 0x512   : > { %v1370_v49 = vsub.f32 %v1362_v39, %v1368_v48 }
 0x514   : > { %v1373_v50 = vmul.f32 1.442695, %v1370_v49 }
 0x515   : > { %v1392_v51 = vpop.permute.xlu0 %1391 }
 0x516   : > { %2584 = vpow2.f32 %v1373_v50  ;;  %2448 = vmatprep.subr.mxu1 %v1392_v51 }
 0x517   : > { %2586 = vrcp.f32 %v1082_v47 }
 0x518   : > { %2588 = vrcp.f32 %v1085_v54 }
 0x523   : > { %v2585_v52 = vpop.eup %2584 }
 0x524   : > { %v1378_v53 = vsel %vm781_vm4, %v2585_v52, 0.0  ;;  %v2587_v55 = vpop.eup %2586 }
 0x525   : > { %1379 = vadd.xlane.f32.xlu0 %v1378_v53  ;;  %v2589_v56 = vpop.eup %2588  ;;  %v1088_v57 = vmul.f32 %v2587_v55, %v1082_v47 }
 0x526   : > { %v1089_v58 = vmul.f32 %v2589_v56, %v1085_v54 }
 0x527   : > { %v1090_v59 = vsub.f32 2.0, %v1088_v57 }
 0x528   : > { %v1091_v61 = vsub.f32 2.0, %v1089_v58 }
 0x529   : > { %v1092_v3 = vmul.f32 %v2587_v55, %v1090_v59 }
 0x52a   : > { %v1093_v9 = vmul.f32 %v2589_v56, %v1091_v61 }
 0x541   : > { %v2466_v60 = vpop.f32.mrf.mxu0 }
 0x542   : > { %v1655_v62 = vsel %vm685_vm3, -1e+20, %v2466_v60 }
 0x543   : > { %v1645_v63 = vpop.f32.mrf.mxu0  ;;  %v1659_v0 = vsel %vm781_vm4, %v1655_v62, -inf }
 0x544   : > { %v1654_v1 = vsel %vm685_vm3, -1e+20, %v1645_v63  ;;  %v2435_v2 = vpop.f32.mrf.mxu1  ;;  %1660 = vmax.xlane.f32.xlu1 %v1659_v0 }
 0x545   : > { %v1656_v8 = vsel %vm781_vm4, %v1654_v1, -inf  ;;  %v1184_v12 = vmul.f32 %v2435_v2, %v1093_v9 }
 0x546   : > { %v1174_v10 = vpop.f32.mrf.mxu1  ;;  %1657 = vmax.xlane.f32.xlu0 %v1656_v8 }
 0x547   : > { %v1183_v11 = vmul.f32 %v1174_v10, %v1092_v3 }
 0x549   : > { %2438 = vmatprep.mubr.msk.f32.mxu1 %vm691_vm1, %v1183_v11 }
 0x54a   : > { %2439 = vmatmul.mubr.msk.f32.vlgmr.msra.gmra.mxu1 %vm691_vm1, %v1184_v12  ;;  %v1377_v14 = vpop.xlane.xlu1 %1376 }
 0x54b   : > { %2449 = vmatpush3.msra.mxu1 %v1392_v51  ;;  %2452 = vmatprep.mubr.msk.f32.mxu1 %vm781_vm4, %v2583_v45 }
 0x54c   : > { %2450 = vmatprep.subr.mxu1 %v1390_v13 }
 0x54d   : > { %2451 = vmatpush3.msra.mxu1 %v1390_v13 }
 0x54e   : > { %2453 = vmatmul.mubr.msk.f32.vlgmr.msra.gmra.mxu1 %vm781_vm4, %v2585_v52  ;;  %2455 = vmatprep.subr.mxu1 %v2263_v26 }
 0x54f   : > { %2456 = vmatpush3.msra.mxu1 %v2263_v26 }
 0x555   : > { %1682 = vrot.lane.b32.xlu1 %v2890_v34, %s2675_s12 }
 0x55c   : > { %1684 = vrot.lane.b32.xlu0 %v2886_v33, %s2675_s12  ;;  %v3000_v33 = vld [vmem:[%s3169_s7] sm:$0x3f]  ;;  %s2676_s12 = smov [#allocation2]  }
 0x55d   : > { %v690_v31 = vrot.slane %v3000_v33, %v683_v23  ;;  %s2614_s25 = sshll.u32 %s2676_s12, 4  ;;  %s2615_s25 = int_to_ptr.vmem [resolvable:$false] %s2614_s25 }
 0x55e   : > { %s2616_s15 = scalar_lea.vmem %s2615_s25, 512  ;;  %p2617_p1 = scmp.lt.s32.totalorder %s3118_s16, %s2615_s25 }
 0x55f   : > { %v974_v36 = vadd.f32 %v2931_v4, %v690_v31  ;;  %v973_v38 = vadd.f32 %v2933_v7, %v690_v31  ;;  %v2272_v4 = vld [vmem:[%s3168_s6 + $0x18] sm:$0xff]  ;;  %v2003_v31 = vld [vmem:[%s3172_s10 + $0x60] sm:$0xff]  ;;  %p2618_p2 = scmp.lt.s32.totalorder %s2616_s15, %s2610_s30 }
 0x561   : > { %p2619_p3 = por %p2618_p2, %p2617_p1 }
 0x563   : > { %p2620_p4 = pnand %p2619_p3, %p2613_p0 }
 0x5ae   : > { %v1380_v15 = vpop.xlane.xlu0 %1379 }
 0x5cd   : > { %v1661_v20 = vpop.xlane.xlu1 %1660 }
 0x5ce   : > { %v1663_v21 = vsub.f32 %v1655_v62, %v1661_v20 }
 0x5cf   : > { %v1658_v19 = vpop.xlane.xlu0 %1657 }
 0x5d0   : > { %v1666_v24 = vmul.f32 1.442695, %v1663_v21  ;;  %v1662_v25 = vsub.f32 %v1654_v1, %v1658_v19 }
 0x5d1   : > { %v1683_v23 = vpop.permute.xlu1 %1682 }
 0x5d2   : > { %2590 = vpow2.f32 %v1666_v24  ;;  %v1664_v27 = vmul.f32 1.442695, %v1662_v25 }
 0x5d3   : > { %v1685_v28 = vpop.permute.xlu0 %1684 }
 0x5d4   : > { %2592 = vpow2.f32 %v1664_v27  ;;  %2467 = vmatprep.subr.mxu1 %v1685_v28 }
 0x5d5   : > { %2594 = vrcp.f32 %v1377_v14 }
 0x5d6   : > { %2596 = vrcp.f32 %v1380_v15 }
 0x5df   : > { %v2591_v16 = vpop.eup %2590 }
 0x5e0   : > { %v1671_v29 = vsel %vm781_vm4, %v2591_v16, 0.0 }
 0x5e1   : > { %v2593_v18 = vpop.eup %2592  ;;  %1672 = vadd.xlane.f32.xlu0 %v1671_v29  ;;  %v1898_v29 = vld [vmem:[%s3170_s8 + $0x8] sm:$0xff] }
 0x5e2   : > { %v1668_v34 = vsel %vm781_vm4, %v2593_v18, 0.0  ;;  %v2595_v17 = vpop.eup %2594 }
 0x5e3   : > { %1669 = vadd.xlane.f32.xlu1 %v1668_v34  ;;  %v2597_v30 = vpop.eup %2596  ;;  %v1383_v32 = vmul.f32 %v2595_v17, %v1377_v14  ;;  %v2006_v34 = vld [vmem:[%s3172_s10 + $0x78] sm:$0xff] }
 0x5e4   : > { %v1384_v35 = vmul.f32 %v2597_v30, %v1380_v15 }
 0x5e5   : > { %v1385_v39 = vsub.f32 2.0, %v1383_v32  ;;  %v2002_v32 = vld [vmem:[%s3172_s10 + $0x58] sm:$0xff] }
 0x5e6   : > { %v1386_v41 = vsub.f32 2.0, %v1384_v35  ;;  %v2001_v35 = vld [vmem:[%s3172_s10 + $0x50] sm:$0xff] }
 0x5e7   : > { %v1387_v45 = vmul.f32 %v2595_v17, %v1385_v39  ;;  %v2005_v17 = vld [vmem:[%s3172_s10 + $0x70] sm:$0xff] }
 0x5e8   : > { %v1388_v46 = vmul.f32 %v2597_v30, %v1386_v41  ;;  %v2004_v30 = vld [vmem:[%s3172_s10 + $0x68] sm:$0xff]  ;;  %v1997_v39 = vld [vmem:[%s3172_s10 + $0x30] sm:$0xff]  ;;  %v1995_v41 = vld [vmem:[%s3172_s10 + $0x20] sm:$0xff] }
 0x60a   : > { %v2440_v37 = vpop.f32.mrf.mxu1 }
 0x60b   : > { %v1269_v40 = vadd.f32 %v2440_v37, %v974_v36  ;;  %v2000_v36 = vld [vmem:[%s3172_s10 + $0x48] sm:$0xff]  ;;  %v1999_v37 = vld [vmem:[%s3172_s10 + $0x40] sm:$0xff] }
 0x60c   : > { %v1259_v42 = vpop.f32.mrf.mxu1 }
 0x60d   : > { %v1268_v43 = vadd.f32 %v1259_v42, %v973_v38  ;;  %v1998_v38 = vld [vmem:[%s3172_s10 + $0x38] sm:$0xff] }
 0x60e   : > { %v2454_v44 = vpop.f32.mrf.mxu1 }
 0x60f   : > { %v1477_v49 = vmul.f32 %v2454_v44, %v1388_v46 }
 0x610   : > { %v1467_v47 = vpop.f32.mrf.mxu1 }
 0x611   : > { %v1476_v48 = vmul.f32 %v1467_v47, %v1387_v45 }
 0x613   : > { %2457 = vmatprep.mubr.msk.f32.mxu1 %vm691_vm1, %v1476_v48  ;;  %v1887_v48 = vsub.s32 1, %v2872_v22 }
 0x614   : > { %2458 = vmatmul.mubr.msk.f32.vlgmr.msra.gmra.mxu1 %vm691_vm1, %v1477_v49 }
 0x615   : > { %2468 = vmatpush3.msra.mxu1 %v1685_v28  ;;  %2471 = vmatprep.mubr.msk.f32.mxu1 %vm781_vm4, %v2593_v18  ;;  %v1900_v28 = vld [vmem:[%s3170_s8 + $0x18] sm:$0xff]  ;;  %v1897_v18 = vld [vmem:[%s3170_s8] sm:$0xff] }
 0x616   : > { %2469 = vmatprep.subr.mxu1 %v1683_v23  ;;  %2479 = vmatprep.subr.mxu0 %v1900_v28 }
 0x617   : > { %2470 = vmatpush3.msra.mxu1 %v1683_v23  ;;  %2480 = vmatpush3.msra.mxu0 %v1900_v28  ;;  %v1888_v23 = vrot.slane %v3000_v33, %v1887_v48 }
 0x618   : > { %2472 = vmatmul.mubr.msk.f32.vlgmr.msra.gmra.mxu1 %vm781_vm4, %v2591_v16  ;;  %2474 = vmatprep.subr.mxu1 %v2272_v4  ;;  %v1899_v16 = vld [vmem:[%s3170_s8 + $0x10] sm:$0xff] }
 0x619   : > { %2475 = vmatpush3.msra.mxu1 %v2272_v4  ;;  %2481 = vmatprep.subr.mxu0 %v1899_v16  ;;  %v1893_v4 = vsub.s32 2, %v2872_v22 }
 0x61a   : > { %2482 = vmatpush3.msra.mxu0 %v1899_v16  ;;  %2490 = vmatprep.subr.mxu1 %v2006_v34 }
 0x61b   : > { %2483 = vmatprep.subr.mxu0 %v1898_v29 }
 0x61c   : > { %2484 = vmatpush3.msra.mxu0 %v1898_v29 }
 0x61d   : > { %2485 = vmatprep.subr.mxu0 %v1897_v18 }
 0x61e   : > { %2486 = vmatpush3.msra.mxu0 %v1897_v18 }
 0x66a   : > { %v1673_v50 = vpop.xlane.xlu0 %1672 }
 0x66c   : > { %v1670_v7 = vpop.xlane.xlu1 %1669 }
 0x66d   : > { %2598 = vrcp.f32 %v1670_v7 }
 0x66e   : > { %2600 = vrcp.f32 %v1673_v50 }
 0x67a   : > { %v2599_v51 = vpop.eup %2598 }
 0x67b   : > { %v2601_v52 = vpop.eup %2600  ;;  %v1676_v53 = vmul.f32 %v2599_v51, %v1670_v7 }
 0x67c   : > { %v1677_v54 = vmul.f32 %v2601_v52, %v1673_v50 }
 0x67d   : > { %v1678_v56 = vsub.f32 2.0, %v1676_v53  ;;  %v1894_v53 = vrot.slane %v3000_v33, %v1893_v4 }
 0x67e   : > { %v1679_v58 = vsub.f32 2.0, %v1677_v54 }
 0x67f   : > { %v1680_v62 = vmul.f32 %v2599_v51, %v1678_v56 }
 0x680   : > { %v1681_v63 = vmul.f32 %v2601_v52, %v1679_v58  ;;  %v1993_v58 = vld [vmem:[%s3172_s10 + $0x10] sm:$0xff] }
 0x6d4   : > { %v2459_v55 = vpop.f32.mrf.mxu1 }
 0x6d5   : > { %v1562_v57 = vadd.f32 %v2459_v55, %v1269_v40  ;;  %v1996_v40 = vld [vmem:[%s3172_s10 + $0x28] sm:$0xff] }
 0x6d6   : > { %v1552_v59 = vpop.f32.mrf.mxu1 }
 0x6d7   : > { %v1561_v60 = vadd.f32 %v1552_v59, %v1268_v43  ;;  %v1992_v59 = vld [vmem:[%s3172_s10 + $0x8] sm:$0xff] }
 0x6d8   : > { %v2473_v61 = vpop.f32.mrf.mxu1 }
 0x6d9   : > { %v1770_v2 = vmul.f32 %v2473_v61, %v1681_v63  ;;  %v2275_v61 = vld [vmem:[%s3171_s9] ss:$0 sm:$0xff] }
 0x6da   : > { %v1760_v0 = vpop.f32.mrf.mxu1 }
 0x6db   : > { %v1769_v1 = vmul.f32 %v1760_v0, %v1680_v62 }
 0x6dd   : > { %2476 = vmatprep.mubr.msk.f32.mxu1 %vm691_vm1, %v1769_v1 }
 0x6de   : > { %2477 = vmatmul.mubr.msk.f32.vlgmr.msra.gmra.mxu1 %vm691_vm1, %v1770_v2 }
 0x6df   : > { %2491 = vmatpush3.msra.mxu1 %v2006_v34 }
 0x6e0   : > { %2492 = vmatprep.subr.mxu1 %v2005_v17 }
 0x6e1   : > { %2493 = vmatpush3.msra.mxu1 %v2005_v17 }
 0x6e2   : > { %2494 = vmatprep.subr.mxu1 %v2004_v30 }
 0x6e3   : > { %2495 = vmatpush3.msra.mxu1 %v2004_v30 }
 0x6e4   : > { %2496 = vmatprep.subr.mxu1 %v2003_v31 }
 0x6e5   : > { %2497 = vmatpush3.msra.mxu1 %v2003_v31 }
 0x6e6   : > { %2498 = vmatprep.subr.mxu1 %v2002_v32 }
 0x6e7   : > { %2499 = vmatpush3.msra.mxu1 %v2002_v32 }
 0x6e8   : > { %2500 = vmatprep.subr.mxu1 %v2001_v35 }
 0x6e9   : > { %2501 = vmatpush3.msra.mxu1 %v2001_v35  ;;  %v2116_v35 = vsub.s32 4, %v2872_v22 }
 0x6ea   : > { %2502 = vmatprep.subr.mxu1 %v2000_v36 }
 0x6eb   : > { %2503 = vmatpush3.msra.mxu1 %v2000_v36  ;;  %v2122_v36 = vsub.s32 5, %v2872_v22 }
 0x6ec   : > { %2504 = vmatprep.subr.mxu1 %v1999_v37 }
 0x6ed   : > { %2505 = vmatpush3.msra.mxu1 %v1999_v37  ;;  %v2117_v37 = vrot.slane %v3000_v33, %v2116_v35 }
 0x6ee   : > { %2506 = vmatprep.subr.mxu1 %v1998_v38 }
 0x6ef   : > { %2507 = vmatpush3.msra.mxu1 %v1998_v38 }
 0x6f0   : > { %2508 = vmatprep.subr.mxu1 %v1997_v39 }
 0x6f1   : > { %2509 = vmatpush3.msra.mxu1 %v1997_v39 }
 0x6f2   : > { %2510 = vmatprep.subr.mxu1 %v1996_v40 }
 0x6f3   : > { %2511 = vmatpush3.msra.mxu1 %v1996_v40  ;;  %v2123_v40 = vrot.slane %v3000_v33, %v2122_v36 }
 0x6f4   : > { %2512 = vmatprep.subr.mxu1 %v1995_v41 }
 0x6f5   : > { %2513 = vmatpush3.msra.mxu1 %v1995_v41 }
 0x79e   : > { %v2478_v3 = vpop.f32.mrf.mxu1 }
 0x79f   : > { %v1855_v8 = vadd.f32 %v2478_v3, %v1562_v57  ;;  %v1994_v57 = vld [vmem:[%s3172_s10 + $0x18] sm:$0xff] }
 0x7a0   : > { %v1845_v9 = vpop.f32.mrf.mxu1  ;;  %2514 = vmatprep.subr.mxu1 %v1994_v57 }
 0x7a1   : > { %v1854_v10 = vadd.f32 %v1845_v9, %v1561_v60  ;;  %v1857_v11 = vadd.f32 %v1855_v8, %v2811_v6  ;;  %2515 = vmatpush3.msra.mxu1 %v1994_v57  ;;  %v1991_v60 = vld [vmem:[%s3172_s10] sm:$0xff]  ;;  %v2009_v8 = vsub.s32 3, %v2872_v22 }
 0x7a2   : > { %2516 = vmatprep.subr.mxu1 %v1993_v58 }
 0x7a3   : > { %v1861_v12 = vsel %vm432_vm0, %v1857_v11, 0.0  ;;  %v1856_v13 = vadd.f32 %v1854_v10, %v2809_v5  ;;  %2517 = vmatpush3.msra.mxu1 %v1993_v58  ;;  %v2010_v9 = vrot.slane %v3000_v33, %v2009_v8 }
 0x7a4   : > { %1862 = vadd.xlane.f32.xlu1 %v1861_v12  ;;  %2518 = vmatprep.subr.mxu1 %v1992_v59 }
 0x7a5   : > { %v1858_v26 = vsel %vm432_vm0, %v1856_v13, 0.0  ;;  %2519 = vmatpush3.msra.mxu1 %v1992_v59 }
 0x7a6   : > { %1859 = vadd.xlane.f32.xlu0 %v1858_v26  ;;  %2520 = vmatprep.subr.mxu1 %v1991_v60 }
 0x7a7   : > { %2521 = vmatpush3.msra.mxu1 %v1991_v60 }
 0x82d   : > { %v1863_v14 = vpop.xlane.xlu1 %1862 }
 0x82e   : > { %v1866_v15 = vmul.f32 0.03125, %v1863_v14 }
 0x82f   : > { %v1860_v20 = vpop.xlane.xlu0 %1859 }
 0x830   : > { %v3020_v21 = vsub.f32 %v1857_v11, %v1866_v15  ;;  %v1865_v19 = vmul.f32 0.03125, %v1860_v20 }
 0x832   : > { %v3022_v24 = vsub.f32 %v1856_v13, %v1865_v19  ;;  %v1870_v25 = vmul.f32 %v3020_v21, %v3020_v21 }
 0x834   : > { %v1874_v6 = vsel %vm432_vm0, %v1870_v25, 0.0  ;;  %v1869_v5 = vmul.f32 %v3022_v24, %v3022_v24 }
 0x835   : > { %1875 = vadd.xlane.f32.xlu1 %v1874_v6 }
 0x836   : > { %v1871_v27 = vsel %vm432_vm0, %v1869_v5, 0.0 }
 0x837   : > { %1872 = vadd.xlane.f32.xlu0 %v1871_v27 }
 0x8be   : > { %v1876_v42 = vpop.xlane.xlu1 %1875 }
 0x8bf   : > { %v1878_v43 = vmul.f32 0.03125, %v1876_v42 }
 0x8c0   : > { %v1873_v44 = vpop.xlane.xlu0 %1872 }
 0x8c1   : > { %v1880_v45 = vadd.f32 1e-05, %v1878_v43  ;;  %v1877_v46 = vmul.f32 0.03125, %v1873_v44 }
 0x8c3   : > { %2602 = vrsqrt.f32 %v1880_v45  ;;  %v1879_v47 = vadd.f32 1e-05, %v1877_v46 }
 0x8c5   : > { %2604 = vrsqrt.f32 %v1879_v47 }
 0x8d0   : > { %v2603_v49 = vpop.eup %2602 }
 0x8d1   : > { %v1884_v7 = vmul.f32 %v2603_v49, %v3020_v21 }
 0x8d2   : > { %v2605_v50 = vpop.eup %2604 }
 0x8d3   : > { %v1883_v51 = vmul.f32 %v2605_v50, %v3022_v24  ;;  %v1890_v52 = vmul.f32 %v1888_v23, %v1884_v7 }
 0x8d5   : > { %v1889_v54 = vmul.f32 %v1888_v23, %v1883_v51  ;;  %v1896_v56 = vadd.f32 %v1894_v53, %v1890_v52 }
 0x8d7   : > { %v1895_v55 = vadd.f32 %v1894_v53, %v1889_v54 }
 0x8d9   : > { %2487 = vmatprep.mubr.msk.f32.mxu0 %vm432_vm0, %v1895_v55 }
 0x8da   : > { %2488 = vmatmul.mubr.msk.f32.vlgmr.msra.gmra.mxu0 %vm432_vm0, %v1896_v56 }
 0x99a   : > { %v2489_v62 = vpop.f32.mrf.mxu0 }
 0x99b   : > { %v1986_v63 = vadd.f32 %v2489_v62, %v2275_v61 }
 0x99c   : > { %v1980_v0 = vpop.f32.mrf.mxu0 }
 0x99d   : > { %v1981_v1 = vadd.f32 %v2275_v61, %v1980_v0  ;;  %v1990_v3 = vmax.f32 %v1986_v63, 0.0 }
 0x99f   : > { %v1989_v2 = vmax.f32 %v1981_v1, 0.0 }
 0x9a1   : > { %2522 = vmatprep.mubr.f32.mxu1 %v1989_v2 }
 0x9a2   : > { %2523 = vmatmul.mubr.f32.vlgmr.msra.gmra.mxu1 %v1990_v3 }
 0xa62   : > { %v2524_v10 = vpop.f32.mrf.mxu1 }
 0xa63   : > { %v2083_v11 = vadd.f32 %v2524_v10, %v2010_v9 }
 0xa64   : > { %v2077_v12 = vpop.f32.mrf.mxu1 }
 0xa65   : > { %v2078_v13 = vadd.f32 %v2077_v12, %v2010_v9  ;;  %v2087_v26 = vadd.f32 %v2083_v11, %v1896_v56 }
 0xa67   : > { %v2091_v14 = vsel %vm432_vm0, %v2087_v26, 0.0  ;;  %v2086_v15 = vadd.f32 %v2078_v13, %v1895_v55 }
 0xa68   : > { %2092 = vadd.xlane.f32.xlu1 %v2091_v14 }
 0xa69   : > { %v2088_v20 = vsel %vm432_vm0, %v2086_v15, 0.0 }
 0xa6a   : > { %2089 = vadd.xlane.f32.xlu0 %v2088_v20 }
 0xaf1   : > { %v2093_v21 = vpop.xlane.xlu1 %2092 }
 0xaf2   : > { %v2095_v19 = vmul.f32 0.03125, %v2093_v21 }
 0xaf3   : > { %v2090_v24 = vpop.xlane.xlu0 %2089 }
 0xaf4   : > { %v2097_v25 = vsub.f32 %v2087_v26, %v2095_v19  ;;  %v2094_v6 = vmul.f32 0.03125, %v2090_v24 }
 0xaf6   : > { %v2096_v5 = vsub.f32 %v2086_v15, %v2094_v6  ;;  %v2099_v27 = vmul.f32 %v2097_v25, %v2097_v25 }
 0xaf8   : > { %v2103_v28 = vsel %vm432_vm0, %v2099_v27, 0.0  ;;  %v2098_v16 = vmul.f32 %v2096_v5, %v2096_v5 }
 0xaf9   : > { %2104 = vadd.xlane.f32.xlu1 %v2103_v28 }
 0xafa   : > { %v2100_v29 = vsel %vm432_vm0, %v2098_v16, 0.0 }
 0xafb   : > { %2101 = vadd.xlane.f32.xlu0 %v2100_v29 }
 0xb82   : > { %v2105_v18 = vpop.xlane.xlu1 %2104 }
 0xb83   : > { %v2107_v34 = vmul.f32 0.03125, %v2105_v18 }
 0xb84   : > { %v2102_v17 = vpop.xlane.xlu0 %2101 }
 0xb85   : > { %v2109_v30 = vadd.f32 1e-05, %v2107_v34  ;;  %v2106_v31 = vmul.f32 0.03125, %v2102_v17 }
 0xb87   : > { %2606 = vrsqrt.f32 %v2109_v30  ;;  %v2108_v32 = vadd.f32 1e-05, %v2106_v31 }
 0xb89   : > { %2608 = vrsqrt.f32 %v2108_v32 }
 0xb94   : > { %v2607_v38 = vpop.eup %2606 }
 0xb95   : > { %v2113_v39 = vmul.f32 %v2607_v38, %v2097_v25 }
 0xb96   : > { %v2609_v41 = vpop.eup %2608 }
 0xb97   : > { %v2119_v42 = vmul.f32 %v2117_v37, %v2113_v39  ;;  %v2112_v43 = vmul.f32 %v2609_v41, %v2096_v5 }
 0xb99   : > { %v2118_v44 = vmul.f32 %v2117_v37, %v2112_v43  ;;  %v2125_v45 = vadd.f32 %v2123_v40, %v2119_v42 }
 0xb9b   : > { %v2124_v22 = vadd.f32 %v2123_v40, %v2118_v44  ;;  %2127 = vst.msk [vmem:[%s407_s14 + $0x8] sm:$0xff] %vm432_vm0, %v2125_v45 }
 0xb9d   : > { %2126 = vst.msk [vmem:[%s407_s14] sm:$0xff] %vm432_vm0, %v2124_v22 }
 0xb9e   : > { %2623 = shalt.err (!%p2620_p4)
}
 0xb9f   : > { %s2624_s13 = scalar_lea.hbm %s3116_s29, 256  ;;  %s2628_s24 = scalar_lea.hbm %s3173_s11, 512 }
 0xba0   : > { %p2625_p7 = scmp.ne.s32.totalorder %s3116_s29, %s2624_s13  ;;  %p2629_p10 = scmp.lt.s32.totalorder %s3116_s29, %s3173_s11 }
 0xba1   : > { %p2630_p11 = scmp.lt.s32.totalorder %s2628_s24, %s2624_s13 }
 0xba2   : > { %p2626_p8 = pnand %p2625_p7, %p2777_p5 }
 0xba3   : > { %p2631_p12 = por %p2630_p11, %p2629_p10 }
 0xba4   : > { %p2627_p9 = pneg %p2626_p8 }
 0xba6   : > { %p2632_p13 = pnand %p2631_p12, %p2627_p9 }
 0xba8   : > { %2635 = shalt.err (!%p2632_p13)
}
 0xba9   : > { %s2677_s30 = smov 128   ;;  %s2678_s25 = smov 8  }
 0xbaa   : > { %2525 = dma.vmem_to_hbm [thread:$0]  (%p2777_p5), %s3118_s16, 256, %s3116_s29, %s3122_s21, %s2677_s30, %s2677_s30, %s2678_s25  }
 0xbab PF: > { %p2531_p0 = scmp.ge.s32.totalorder %s2670_s20, 2  ;;  %s2157_s15 = sand.u32 1, %s2658_s17  }
 0xbac   : > { %s2158_s0 = scalar_lea.sflag [#allocation3], %s2157_s15 }
 0xbad   : > { %p2528_p1 = pnand %p2531_p0, %p2781_p6 }
 0xbaf   : > { %p2529_p2 = pneg %p2528_p1 }
 0xbb1   : > { %2653 = dma.done.wait (%p2529_p2), %s2158_s0, 256  }
 0xbb2   : > { %2655 = vsyncadd (%p2529_p2), %s2158_s0, 4294967040  ;;  %p21_p3 = scmp.ge.s32.totalorder %s2764_s23, 4   ;;  %s3178_s17 = smov %s2662_s18 }
 0xbb3   : > { %s3179_s18 = smov %s2666_s19  ;;  %s3180_s19 = smov %s2775_s26 }
 0xbb4   : > { %s3181_s20 = smov %s2764_s23  ;;  %23 = sbr.rel (!%p21_p3) target bundleno = 5 (0x5), region = 108 }
 0xbb9   :  { %2163 = vsyncpa [#allocation3], 1 }
 0xbba   :  { %2165 = vsyncpa [#allocation3 + $0x1], 1 }

</bundles_post_ra>
